<compile_context>
chip_gen: v7x
topology: tpu7x:2x2x1
jax: 0.10.0
libtpu: 0.0.40
codegen_flags: <defaults>
</compile_context>

<pallas_src>
import jax
import jax.numpy as jnp
from jax import lax
from jax.experimental import pallas as pl
from jax.experimental.pallas import tpu as pltpu

EPS = 1e-6
NEG_SLOPE = 0.01  # nn.LeakyReLU() default and VNLeakyReLU default


def _gvp_kernel(vec_ref, sca_ref, w1f_ref, wsn_ref, wss_ref, w2f_ref,
                wgn_ref, wgs_ref, bg_ref, wdf_ref, sca_out_ref, vec_out_ref):
    H = wsn_ref.shape[1]          # dim_hid
    V = wdf_ref.shape[0] // 3     # out_vector

    x_v = vec_ref[...]            # (TM, 3*Vin)  canonical order: col = v*3 + c
    x_s = sca_ref[...]            # (TM, Sin)

    # W @ X.T : contract over the channel axis of the untransposed input tile
    # so results land with M on lanes (MXU does the layout flip for free).
    def mm_t(w, x):
        return lax.dot_general(w, x, (((1,), (1,)), ((), ())),
                               preferred_element_type=jnp.float32)

    # ---------------- GVLinear ----------------
    # Fused VNLinear #1: one MXU call for all 3 components (component-major rows).
    inter = mm_t(w1f_ref[...], x_v)                                  # (3H, TM)
    i0, i1, i2 = inter[0:H], inter[H:2 * H], inter[2 * H:3 * H]
    norm = jnp.sqrt(i0 * i0 + i1 * i1 + i2 * i2)                     # (H, TM)

    # lin_scalar on cat([norm, scalar]) -> two dots.
    out_s = (jnp.dot(wsn_ref[...], norm, preferred_element_type=jnp.float32)
             + mm_t(wss_ref[...], x_s))                              # (Sout, TM)

    # Fused VNLinear #2 (block-diagonal weight): one MXU call.
    out_v = jnp.dot(w2f_ref[...], inter,
                    preferred_element_type=jnp.float32)              # (3V, TM)

    # scalar -> vector gating.  Gate logits use weights pre-folded through
    # lin_scalar (Wgn = Wg@Wsn, Wgs = Wg@Wss) so they do NOT depend on out_s:
    # one fewer stage in the serialized MXU chain.
    gate = jax.nn.sigmoid(
        jnp.dot(wgn_ref[...], norm, preferred_element_type=jnp.float32)
        + mm_t(wgs_ref[...], x_s) + bg_ref[...])                     # (V, TM)

    # Per-component gating; the single concat is only what the Wdf matmul needs.
    o0 = out_v[0:V] * gate
    o1 = out_v[V:2 * V] * gate
    o2 = out_v[2 * V:3 * V] * gate
    ovg = jnp.concatenate([o0, o1, o2], axis=0)                      # (3V, TM)

    # ---------------- VNLeakyReLU ----------------
    d = jnp.dot(wdf_ref[...], ovg,
                preferred_element_type=jnp.float32)                  # (3V, TM)
    d0, d1, d2 = d[0:V], d[V:2 * V], d[2 * V:3 * V]
    dot = o0 * d0 + o1 * d1 + o2 * d2                                # (V, TM)
    dns = d0 * d0 + d1 * d1 + d2 * d2                                # (V, TM)
    # Exact divide (matches PyTorch); the kernel is memory-bound so this is free.
    inv = dot / (dns + EPS)
    mask = dot >= 0.0

    def act(o_c, d_c):
        return (NEG_SLOPE * o_c
                + (1.0 - NEG_SLOPE) * jnp.where(mask, o_c, o_c - inv * d_c))

    # Sublane-aligned slice stores (V multiple of 8) -> no (3V, TM) concat temp.
    vec_out_ref[0:V, :] = act(o0, d0).astype(vec_out_ref.dtype)
    vec_out_ref[V:2 * V, :] = act(o1, d1).astype(vec_out_ref.dtype)
    vec_out_ref[2 * V:3 * V, :] = act(o2, d2).astype(vec_out_ref.dtype)

    # ---------------- scalar LeakyReLU ----------------
    sca_out_ref[...] = jnp.where(out_s >= 0.0, out_s,
                                 NEG_SLOPE * out_s).astype(sca_out_ref.dtype)


def prepare_gvp_params(params):
    """Host-side fused-weight construction.

    Call ONCE when parameters are loaded (hoisted out of the per-forward path:
    these are several tiny XLA ops whose launch overhead is real relative to a
    kernel that is only a few microseconds at small M).
    """
    W1, W2, Ws, Wg, bg, Wd = (jnp.asarray(params[k], jnp.float32)
                              for k in ("W1", "W2", "Ws", "Wg", "bg", "Wd"))
    H, Vin = W1.shape                 # dim_hid, in_vector
    Vout = W2.shape[0]
    Sout = Ws.shape[0]
    Sin = Ws.shape[1] - H

    # W1f[c*H + h, v*3 + c] = W1[h, v]: output rows component-major, input cols
    # matching the canonical [.., Vin, 3] interleaved memory order.
    W1f = jnp.zeros((3 * H, 3 * Vin), jnp.float32)
    for c in range(3):
        W1f = W1f.at[c * H:(c + 1) * H, c::3].set(W1)
    eye3 = jnp.eye(3, dtype=jnp.float32)
    W2f = jnp.kron(eye3, W2)          # (3Vout, 3H)   block-diagonal
    Wdf = jnp.kron(eye3, Wd)          # (3Vout, 3Vout)
    Wsn = Ws[:, :H]                   # (Sout, H)     norm half of the cat
    Wss = Ws[:, H:]                   # (Sout, Sin)   scalar half of the cat
    Wgn = Wg @ Wsn                    # (Vout, H)     gate folded through lin_scalar
    Wgs = Wg @ Wss                    # (Vout, Sin)
    bg2 = bg.reshape(Vout, 1)

    return dict(W1f=W1f, Wsn=Wsn, Wss=Wss, W2f=W2f, Wgn=Wgn, Wgs=Wgs, bg=bg2,
                Wdf=Wdf, H=H, Vin=Vin, Sin=Sin, Sout=Sout, Vout=Vout)


def _round_up(x, m):
    return -(-x // m) * m


def _pick_tm(M, tm_max=4096):
    """Lane-dense row tile: large (amortize ~0.35us/step), >=2 balanced grid
    steps for v7x megacore, capped so 128-lane-padded narrow input tiles
    (double-buffered) stay well inside v5e's 16 MiB scoped VMEM default."""
    return min(tm_max, max(128, _round_up(-(-M // 2), 128)))


def gv_perceptron_vn_cm(sca2d, vec2d, prep, *, tm=None):
    """Core kernel call in the canonical channel-major activation layout.

    sca2d: [M, Sin], vec2d: [M, Vin*3] (canonical PyTorch memory order, free
    reshapes of the [B,N,...] tensors).  Returns lane-dense channel-major
    outputs: sca_out (Sout, M), vec_out (3*Vout, M) with rows c*Vout + o.
    """
    M, Sin = sca2d.shape
    Vin3 = vec2d.shape[1]
    H, Vin, Sout, Vout = prep["H"], prep["Vin"], prep["Sout"], prep["Vout"]
    assert Sin == prep["Sin"] and Vin3 == 3 * Vin

    if tm is None:
        tm = _pick_tm(M)
    assert tm % 128 == 0, "tm must be a multiple of 128 (lane-dense tiles)"

    # No host-side padding: Pallas handles the partial tail block (OOB input
    # lanes are garbage but every column is independent; OOB output lanes are
    # not written back to HBM).
    grid_m = pl.cdiv(M, tm)

    full = lambda i: (0, 0)
    sca_out_t, vec_out_t = pl.pallas_call(
        _gvp_kernel,
        out_shape=(jax.ShapeDtypeStruct((Sout, M), jnp.float32),
                   jax.ShapeDtypeStruct((3 * Vout, M), jnp.float32)),
        grid_spec=pltpu.PrefetchScalarGridSpec(
            num_scalar_prefetch=0,
            grid=(grid_m,),
            in_specs=[
                pl.BlockSpec((tm, 3 * Vin), lambda i: (i, 0)),       # vec tile
                pl.BlockSpec((tm, Sin), lambda i: (i, 0)),           # sca tile
                pl.BlockSpec((3 * H, 3 * Vin), full),                # W1f
                pl.BlockSpec((Sout, H), full),                       # Wsn
                pl.BlockSpec((Sout, Sin), full),                     # Wss
                pl.BlockSpec((3 * Vout, 3 * H), full),               # W2f
                pl.BlockSpec((Vout, H), full),                       # Wgn
                pl.BlockSpec((Vout, Sin), full),                     # Wgs
                pl.BlockSpec((Vout, 1), full),                       # bg
                pl.BlockSpec((3 * Vout, 3 * Vout), full),            # Wdf
            ],
            out_specs=[
                pl.BlockSpec((Sout, tm), lambda i: (0, i)),          # lane-dense
                pl.BlockSpec((3 * Vout, tm), lambda i: (0, i)),      # lane-dense
            ],
        ),
        compiler_params=pltpu.CompilerParams(
            dimension_semantics=("parallel",),
            vmem_limit_bytes=32 * 1024 * 1024),
    )(vec2d, sca2d, prep["W1f"], prep["Wsn"], prep["Wss"], prep["W2f"],
      prep["Wgn"], prep["Wgs"], prep["bg"], prep["Wdf"])
    return sca_out_t, vec_out_t


def gv_perceptron_vn(sca, vec, prep, *, tm=None):
    """PyTorch-layout boundary wrapper.

    sca: [B, N, Sin] f32, vec: [B, N, Vin, 3] f32 -> (sca_out [B,N,Sout],
    vec_out [B,N,Vout,3]).
    """
    B, N, Sin = sca.shape
    Vin = vec.shape[2]
    M = B * N
    Sout, Vout = prep["Sout"], prep["Vout"]

    sca_t, vec_t = gv_perceptron_vn_cm(sca.reshape(M, Sin),
                                       vec.reshape(M, Vin * 3), prep, tm=tm)

    # TODO(synk): in a multi-layer network keep the channel-major (C, M) layout
    # from gv_perceptron_vn_cm canonical across layers and do this relayout
    # once at the network edge, not per layer (it is a full HBM pass).
    sca_out = sca_t.T.reshape(B, N, Sout)
    vec_out = (vec_t.reshape(3, Vout, M)
               .transpose(2, 1, 0).reshape(B, N, Vout, 3))
    return sca_out, vec_out


def reference(sca, vec, params):
    """Pure-JAX replica of the PyTorch forward (for validation)."""
    W1, W2, Ws, Wg, bg, Wd = (params[k] for k in ("W1", "W2", "Ws", "Wg", "bg", "Wd"))
    inter = jnp.einsum('bnvc,hv->bnhc', vec, W1)                     # VNLinear 1
    norm = jnp.sqrt(jnp.sum(inter * inter, axis=-1))                 # torch.norm dim=-1
    cat = jnp.concatenate([norm, sca], axis=-1)
    out_s = cat @ Ws.T                                               # lin_scalar
    out_v = jnp.einsum('bnhc,oh->bnoc', inter, W2)                   # VNLinear 2
    gate = jax.nn.sigmoid(out_s @ Wg.T + bg)[..., None]
    out_v = gate * out_v
    d = jnp.einsum('bnoc,ko->bnkc', out_v, Wd)                       # VNLeakyReLU
    dot = jnp.sum(out_v * d, axis=-1, keepdims=True)
    dns = jnp.sum(d * d, axis=-1, keepdims=True)
    mask = (dot >= 0).astype(out_v.dtype)
    vec_act = (NEG_SLOPE * out_v + (1 - NEG_SLOPE)
               * (mask * out_v + (1 - mask) * (out_v - dot / (dns + EPS) * d)))
    sca_act = jnp.where(out_s >= 0, out_s, NEG_SLOPE * out_s)
    return sca_act, vec_act


if __name__ == "__main__":
    # module config: GVPerceptronVN(in_scalar=16, in_vector=8, out_scalar=16, out_vector=8)
    B, N = 2, 600                        # M = 1200 -> tm = 640, grid of 2 balanced tiles
    in_scalar, in_vector, out_scalar, out_vector = 16, 8, 16, 8
    dim_hid = max(in_vector, out_vector)

    key = jax.random.PRNGKey(0)
    ks = jax.random.split(key, 8)
    sca = jax.random.normal(ks[0], (B, N, in_scalar), jnp.float32)
    vec = jax.random.normal(ks[1], (B, N, in_vector, 3), jnp.float32)

    # deterministic synthetic parameters (shapes follow the nn.Linear layers)
    params = {
        "W1": 0.3 * jax.random.normal(ks[2], (dim_hid, in_vector), jnp.float32),        # lin_vector
        "W2": 0.3 * jax.random.normal(ks[3], (out_vector, dim_hid), jnp.float32),       # lin_vector2
        "Ws": 0.3 * jax.random.normal(ks[4], (out_scalar, dim_hid + in_scalar), jnp.float32),  # lin_scalar
        "Wg": 0.3 * jax.random.normal(ks[5], (out_vector, out_scalar), jnp.float32),    # scalar_to_vector_gates
        "bg": 0.1 * jax.random.normal(ks[6], (out_vector,), jnp.float32),
        "Wd": 0.3 * jax.random.normal(ks[7], (out_vector, out_vector), jnp.float32),    # VNLeakyReLU map_to_dir
    }

    prep = prepare_gvp_params(params)                 # once, at parameter-load time
    fwd = jax.jit(lambda s, v: gv_perceptron_vn(s, v, prep))

    sca_out, vec_out = fwd(sca, vec)
    jax.block_until_ready((sca_out, vec_out))

    sca_ref, vec_ref = reference(sca, vec, params)
    assert sca_out.shape == (B, N, out_scalar) and vec_out.shape == (B, N, out_vector, 3)
    assert jnp.allclose(sca_out, sca_ref, rtol=1e-4, atol=1e-4)
    assert jnp.allclose(vec_out, vec_ref, rtol=5e-4, atol=5e-4)
    print("KERNEL_OK")
</pallas_src>

<mosaic_0001>
module attributes {stable_mosaic.version = 11 : i64} {
  func.func @_gvp_kernel(%arg0: i32, %arg1: memref<640x24xf32, #tpu.memory_space<vmem>>, %arg2: memref<640x16xf32, #tpu.memory_space<vmem>>, %arg3: memref<24x24xf32, #tpu.memory_space<vmem>>, %arg4: memref<16x8xf32, #tpu.memory_space<vmem>>, %arg5: memref<16x16xf32, #tpu.memory_space<vmem>>, %arg6: memref<24x24xf32, #tpu.memory_space<vmem>>, %arg7: memref<8x8xf32, #tpu.memory_space<vmem>>, %arg8: memref<8x16xf32, #tpu.memory_space<vmem>>, %arg9: memref<8x1xf32, #tpu.memory_space<vmem>>, %arg10: memref<24x24xf32, #tpu.memory_space<vmem>>, %arg11: memref<16x640xf32, #tpu.memory_space<vmem>>, %arg12: memref<24x640xf32, #tpu.memory_space<vmem>>) attributes {dimension_semantics = [#tpu.dimension_semantics<parallel>], iteration_bounds = array<i64: 2>, scalar_prefetch = 0 : i64, scratch_operands = 0 : i64, tpu.core_type = #tpu.core_type<tc>, window_params = [{transform_indices = @transform_0, window_bounds = array<i64: 640, 24>}, {transform_indices = @transform_1, window_bounds = array<i64: 640, 16>}, {pipeline_mode = #tpu.pipeline_mode<synchronous>, transform_indices = @transform_2, window_bounds = array<i64: 24, 24>}, {pipeline_mode = #tpu.pipeline_mode<synchronous>, transform_indices = @transform_3, window_bounds = array<i64: 16, 8>}, {pipeline_mode = #tpu.pipeline_mode<synchronous>, transform_indices = @transform_4, window_bounds = array<i64: 16, 16>}, {pipeline_mode = #tpu.pipeline_mode<synchronous>, transform_indices = @transform_5, window_bounds = array<i64: 24, 24>}, {pipeline_mode = #tpu.pipeline_mode<synchronous>, transform_indices = @transform_6, window_bounds = array<i64: 8, 8>}, {pipeline_mode = #tpu.pipeline_mode<synchronous>, transform_indices = @transform_7, window_bounds = array<i64: 8, 16>}, {pipeline_mode = #tpu.pipeline_mode<synchronous>, transform_indices = @transform_8, window_bounds = array<i64: 8, 1>}, {pipeline_mode = #tpu.pipeline_mode<synchronous>, transform_indices = @transform_9, window_bounds = array<i64: 24, 24>}, {transform_indices = @transform_10, window_bounds = array<i64: 16, 640>}, {transform_indices = @transform_11, window_bounds = array<i64: 24, 640>}]} {
    %c0 = arith.constant 0 : index
    %c0_0 = arith.constant 0 : index
    %0 = vector.load %arg1[%c0, %c0_0] : memref<640x24xf32, #tpu.memory_space<vmem>>, vector<640x24xf32>
    %c0_1 = arith.constant 0 : index
    %c0_2 = arith.constant 0 : index
    %1 = vector.load %arg2[%c0_1, %c0_2] : memref<640x16xf32, #tpu.memory_space<vmem>>, vector<640x16xf32>
    %c0_3 = arith.constant 0 : index
    %c0_4 = arith.constant 0 : index
    %2 = vector.load %arg3[%c0_3, %c0_4] : memref<24x24xf32, #tpu.memory_space<vmem>>, vector<24x24xf32>
    %cst = arith.constant dense<0.000000e+00> : vector<24x640xf32>
    %3 = tpu.matmul %2, %0, %cst {dimension_numbers = #tpu.dot_dimension_numbers<[1], [1], [0], [0], [0, 0, 1, 0], [], []>} : vector<24x24xf32>, vector<640x24xf32>, vector<24x640xf32> -> vector<24x640xf32>
    %4 = vector.extract_strided_slice %3 {offsets = [0, 0], sizes = [8, 640], strides = [1, 1]} : vector<24x640xf32> to vector<8x640xf32>
    %5 = vector.extract_strided_slice %3 {offsets = [8, 0], sizes = [8, 640], strides = [1, 1]} : vector<24x640xf32> to vector<8x640xf32>
    %6 = vector.extract_strided_slice %3 {offsets = [16, 0], sizes = [8, 640], strides = [1, 1]} : vector<24x640xf32> to vector<8x640xf32>
    %7 = arith.mulf %4, %4 : vector<8x640xf32>
    %8 = arith.mulf %5, %5 : vector<8x640xf32>
    %9 = arith.addf %7, %8 : vector<8x640xf32>
    %10 = arith.mulf %6, %6 : vector<8x640xf32>
    %11 = arith.addf %9, %10 : vector<8x640xf32>
    %12 = math.sqrt %11 : vector<8x640xf32>
    %c0_5 = arith.constant 0 : index
    %c0_6 = arith.constant 0 : index
    %13 = vector.load %arg4[%c0_5, %c0_6] : memref<16x8xf32, #tpu.memory_space<vmem>>, vector<16x8xf32>
    %cst_7 = arith.constant dense<0.000000e+00> : vector<16x640xf32>
    %14 = tpu.matmul %13, %12, %cst_7 {dimension_numbers = #tpu.dot_dimension_numbers<[1], [0], [0], [1], [0, 0, 1, 1], [], []>} : vector<16x8xf32>, vector<8x640xf32>, vector<16x640xf32> -> vector<16x640xf32>
    %c0_8 = arith.constant 0 : index
    %c0_9 = arith.constant 0 : index
    %15 = vector.load %arg5[%c0_8, %c0_9] : memref<16x16xf32, #tpu.memory_space<vmem>>, vector<16x16xf32>
    %cst_10 = arith.constant dense<0.000000e+00> : vector<16x640xf32>
    %16 = tpu.matmul %15, %1, %cst_10 {dimension_numbers = #tpu.dot_dimension_numbers<[1], [1], [0], [0], [0, 0, 1, 0], [], []>} : vector<16x16xf32>, vector<640x16xf32>, vector<16x640xf32> -> vector<16x640xf32>
    %17 = arith.addf %14, %16 : vector<16x640xf32>
    %c0_11 = arith.constant 0 : index
    %c0_12 = arith.constant 0 : index
    %18 = vector.load %arg6[%c0_11, %c0_12] : memref<24x24xf32, #tpu.memory_space<vmem>>, vector<24x24xf32>
    %cst_13 = arith.constant dense<0.000000e+00> : vector<24x640xf32>
    %19 = tpu.matmul %18, %3, %cst_13 {dimension_numbers = #tpu.dot_dimension_numbers<[1], [0], [0], [1], [0, 0, 1, 1], [], []>} : vector<24x24xf32>, vector<24x640xf32>, vector<24x640xf32> -> vector<24x640xf32>
    %c0_14 = arith.constant 0 : index
    %c0_15 = arith.constant 0 : index
    %20 = vector.load %arg7[%c0_14, %c0_15] : memref<8x8xf32, #tpu.memory_space<vmem>>, vector<8x8xf32>
    %cst_16 = arith.constant dense<0.000000e+00> : vector<8x640xf32>
    %21 = tpu.matmul %20, %12, %cst_16 {dimension_numbers = #tpu.dot_dimension_numbers<[1], [0], [0], [1], [0, 0, 1, 1], [], []>} : vector<8x8xf32>, vector<8x640xf32>, vector<8x640xf32> -> vector<8x640xf32>
    %c0_17 = arith.constant 0 : index
    %c0_18 = arith.constant 0 : index
    %22 = vector.load %arg8[%c0_17, %c0_18] : memref<8x16xf32, #tpu.memory_space<vmem>>, vector<8x16xf32>
    %cst_19 = arith.constant dense<0.000000e+00> : vector<8x640xf32>
    %23 = tpu.matmul %22, %1, %cst_19 {dimension_numbers = #tpu.dot_dimension_numbers<[1], [1], [0], [0], [0, 0, 1, 0], [], []>} : vector<8x16xf32>, vector<640x16xf32>, vector<8x640xf32> -> vector<8x640xf32>
    %24 = arith.addf %21, %23 : vector<8x640xf32>
    %c0_20 = arith.constant 0 : index
    %c0_21 = arith.constant 0 : index
    %25 = vector.load %arg9[%c0_20, %c0_21] : memref<8x1xf32, #tpu.memory_space<vmem>>, vector<8x1xf32>
    %26 = vector.broadcast %25 : vector<8x1xf32> to vector<8x640xf32>
    %27 = arith.addf %24, %26 : vector<8x640xf32>
    %28 = arith.negf %27 : vector<8x640xf32>
    %29 = math.exp %28 : vector<8x640xf32>
    %cst_22 = arith.constant 1.000000e+00 : f32
    %30 = vector.broadcast %cst_22 : f32 to vector<8x640xf32>
    %31 = arith.addf %30, %29 : vector<8x640xf32>
    %32 = arith.divf %30, %31 : vector<8x640xf32>
    %33 = vector.extract_strided_slice %19 {offsets = [0, 0], sizes = [8, 640], strides = [1, 1]} : vector<24x640xf32> to vector<8x640xf32>
    %34 = arith.mulf %33, %32 : vector<8x640xf32>
    %35 = vector.extract_strided_slice %19 {offsets = [8, 0], sizes = [8, 640], strides = [1, 1]} : vector<24x640xf32> to vector<8x640xf32>
    %36 = arith.mulf %35, %32 : vector<8x640xf32>
    %37 = vector.extract_strided_slice %19 {offsets = [16, 0], sizes = [8, 640], strides = [1, 1]} : vector<24x640xf32> to vector<8x640xf32>
    %38 = arith.mulf %37, %32 : vector<8x640xf32>
    %39 = tpu.concatenate %34, %36, %38 in 0 : vector<8x640xf32>, vector<8x640xf32>, vector<8x640xf32> -> vector<24x640xf32>
    %c0_23 = arith.constant 0 : index
    %c0_24 = arith.constant 0 : index
    %40 = vector.load %arg10[%c0_23, %c0_24] : memref<24x24xf32, #tpu.memory_space<vmem>>, vector<24x24xf32>
    %cst_25 = arith.constant dense<0.000000e+00> : vector<24x640xf32>
    %41 = tpu.matmul %40, %39, %cst_25 {dimension_numbers = #tpu.dot_dimension_numbers<[1], [0], [0], [1], [0, 0, 1, 1], [], []>} : vector<24x24xf32>, vector<24x640xf32>, vector<24x640xf32> -> vector<24x640xf32>
    %42 = vector.extract_strided_slice %41 {offsets = [0, 0], sizes = [8, 640], strides = [1, 1]} : vector<24x640xf32> to vector<8x640xf32>
    %43 = vector.extract_strided_slice %41 {offsets = [8, 0], sizes = [8, 640], strides = [1, 1]} : vector<24x640xf32> to vector<8x640xf32>
    %44 = vector.extract_strided_slice %41 {offsets = [16, 0], sizes = [8, 640], strides = [1, 1]} : vector<24x640xf32> to vector<8x640xf32>
    %45 = arith.mulf %34, %42 : vector<8x640xf32>
    %46 = arith.mulf %36, %43 : vector<8x640xf32>
    %47 = arith.addf %45, %46 : vector<8x640xf32>
    %48 = arith.mulf %38, %44 : vector<8x640xf32>
    %49 = arith.addf %47, %48 : vector<8x640xf32>
    %50 = arith.mulf %42, %42 : vector<8x640xf32>
    %51 = arith.mulf %43, %43 : vector<8x640xf32>
    %52 = arith.addf %50, %51 : vector<8x640xf32>
    %53 = arith.mulf %44, %44 : vector<8x640xf32>
    %54 = arith.addf %52, %53 : vector<8x640xf32>
    %cst_26 = arith.constant 9.99999997E-7 : f32
    %55 = vector.broadcast %cst_26 : f32 to vector<8x640xf32>
    %56 = arith.addf %54, %55 : vector<8x640xf32>
    %57 = arith.divf %49, %56 : vector<8x640xf32>
    %cst_27 = arith.constant 0.000000e+00 : f32
    %58 = vector.broadcast %cst_27 : f32 to vector<8x640xf32>
    %59 = arith.cmpf oge, %49, %58 : vector<8x640xf32>
    %cst_28 = arith.constant 0.00999999977 : f32
    %60 = vector.broadcast %cst_28 : f32 to vector<8x640xf32>
    %61 = arith.mulf %60, %34 : vector<8x640xf32>
    %62 = arith.mulf %57, %42 : vector<8x640xf32>
    %63 = arith.subf %34, %62 : vector<8x640xf32>
    %64 = arith.select %59, %34, %63 : vector<8x640xi1>, vector<8x640xf32>
    %cst_29 = arith.constant 9.900000e-01 : f32
    %65 = vector.broadcast %cst_29 : f32 to vector<8x640xf32>
    %66 = arith.mulf %65, %64 : vector<8x640xf32>
    %67 = arith.addf %61, %66 : vector<8x640xf32>
    %c0_30 = arith.constant 0 : index
    %c0_31 = arith.constant 0 : index
    %68 = vector.load %arg12[%c0_30, %c0_31] : memref<24x640xf32, #tpu.memory_space<vmem>>, vector<8x640xf32>
    tpu.vector_store %arg12[%c0_30, %c0_31], %67 {strides = array<i32>} : memref<24x640xf32, #tpu.memory_space<vmem>>, vector<8x640xf32>,
    %cst_32 = arith.constant 0.00999999977 : f32
    %69 = vector.broadcast %cst_32 : f32 to vector<8x640xf32>
    %70 = arith.mulf %69, %36 : vector<8x640xf32>
    %71 = arith.mulf %57, %43 : vector<8x640xf32>
    %72 = arith.subf %36, %71 : vector<8x640xf32>
    %73 = arith.select %59, %36, %72 : vector<8x640xi1>, vector<8x640xf32>
    %cst_33 = arith.constant 9.900000e-01 : f32
    %74 = vector.broadcast %cst_33 : f32 to vector<8x640xf32>
    %75 = arith.mulf %74, %73 : vector<8x640xf32>
    %76 = arith.addf %70, %75 : vector<8x640xf32>
    %c8 = arith.constant 8 : index
    %c0_34 = arith.constant 0 : index
    %77 = vector.load %arg12[%c8, %c0_34] : memref<24x640xf32, #tpu.memory_space<vmem>>, vector<8x640xf32>
    tpu.vector_store %arg12[%c8, %c0_34], %76 {strides = array<i32>} : memref<24x640xf32, #tpu.memory_space<vmem>>, vector<8x640xf32>,
    %cst_35 = arith.constant 0.00999999977 : f32
    %78 = vector.broadcast %cst_35 : f32 to vector<8x640xf32>
    %79 = arith.mulf %78, %38 : vector<8x640xf32>
    %80 = arith.mulf %57, %44 : vector<8x640xf32>
    %81 = arith.subf %38, %80 : vector<8x640xf32>
    %82 = arith.select %59, %38, %81 : vector<8x640xi1>, vector<8x640xf32>
    %cst_36 = arith.constant 9.900000e-01 : f32
    %83 = vector.broadcast %cst_36 : f32 to vector<8x640xf32>
    %84 = arith.mulf %83, %82 : vector<8x640xf32>
    %85 = arith.addf %79, %84 : vector<8x640xf32>
    %c16 = arith.constant 16 : index
    %c0_37 = arith.constant 0 : index
    %86 = vector.load %arg12[%c16, %c0_37] : memref<24x640xf32, #tpu.memory_space<vmem>>, vector<8x640xf32>
    tpu.vector_store %arg12[%c16, %c0_37], %85 {strides = array<i32>} : memref<24x640xf32, #tpu.memory_space<vmem>>, vector<8x640xf32>,
    %cst_38 = arith.constant 0.000000e+00 : f32
    %87 = vector.broadcast %cst_38 : f32 to vector<16x640xf32>
    %88 = arith.cmpf oge, %17, %87 : vector<16x640xf32>
    %cst_39 = arith.constant 0.00999999977 : f32
    %89 = vector.broadcast %cst_39 : f32 to vector<16x640xf32>
    %90 = arith.mulf %89, %17 : vector<16x640xf32>
    %91 = arith.select %88, %17, %90 : vector<16x640xi1>, vector<16x640xf32>
    %c0_40 = arith.constant 0 : index
    %c0_41 = arith.constant 0 : index
    %92 = vector.load %arg11[%c0_40, %c0_41] : memref<16x640xf32, #tpu.memory_space<vmem>>, vector<16x640xf32>
    tpu.vector_store %arg11[%c0_40, %c0_41], %91 {strides = array<i32>} : memref<16x640xf32, #tpu.memory_space<vmem>>, vector<16x640xf32>,
    return
  }
  func.func @transform_0(%arg0: i32) -> (i32, i32) {
    %c0_i32 = arith.constant 0 : i32
    %c0_i32_0 = arith.constant 0 : i32
    return %arg0, %c0_i32 : i32, i32
  }
  func.func @transform_1(%arg0: i32) -> (i32, i32) {
    %c0_i32 = arith.constant 0 : i32
    %c0_i32_0 = arith.constant 0 : i32
    return %arg0, %c0_i32 : i32, i32
  }
  func.func @transform_2(%arg0: i32) -> (i32, i32) {
    %c0_i32 = arith.constant 0 : i32
    %c0_i32_0 = arith.constant 0 : i32
    %c0_i32_1 = arith.constant 0 : i32
    return %c0_i32, %c0_i32_0 : i32, i32
  }
  func.func @transform_3(%arg0: i32) -> (i32, i32) {
    %c0_i32 = arith.constant 0 : i32
    %c0_i32_0 = arith.constant 0 : i32
    %c0_i32_1 = arith.constant 0 : i32
    return %c0_i32, %c0_i32_0 : i32, i32
  }
  func.func @transform_4(%arg0: i32) -> (i32, i32) {
    %c0_i32 = arith.constant 0 : i32
    %c0_i32_0 = arith.constant 0 : i32
    %c0_i32_1 = arith.constant 0 : i32
    return %c0_i32, %c0_i32_0 : i32, i32
  }
  func.func @transform_5(%arg0: i32) -> (i32, i32) {
    %c0_i32 = arith.constant 0 : i32
    %c0_i32_0 = arith.constant 0 : i32
    %c0_i32_1 = arith.constant 0 : i32
    return %c0_i32, %c0_i32_0 : i32, i32
  }
  func.func @transform_6(%arg0: i32) -> (i32, i32) {
    %c0_i32 = arith.constant 0 : i32
    %c0_i32_0 = arith.constant 0 : i32
    %c0_i32_1 = arith.constant 0 : i32
    return %c0_i32, %c0_i32_0 : i32, i32
  }
  func.func @transform_7(%arg0: i32) -> (i32, i32) {
    %c0_i32 = arith.constant 0 : i32
    %c0_i32_0 = arith.constant 0 : i32
    %c0_i32_1 = arith.constant 0 : i32
    return %c0_i32, %c0_i32_0 : i32, i32
  }
  func.func @transform_8(%arg0: i32) -> (i32, i32) {
    %c0_i32 = arith.constant 0 : i32
    %c0_i32_0 = arith.constant 0 : i32
    %c0_i32_1 = arith.constant 0 : i32
    return %c0_i32, %c0_i32_0 : i32, i32
  }
  func.func @transform_9(%arg0: i32) -> (i32, i32) {
    %c0_i32 = arith.constant 0 : i32
    %c0_i32_0 = arith.constant 0 : i32
    %c0_i32_1 = arith.constant 0 : i32
    return %c0_i32, %c0_i32_0 : i32, i32
  }
  func.func @transform_10(%arg0: i32) -> (i32, i32) {
    %c0_i32 = arith.constant 0 : i32
    %c0_i32_0 = arith.constant 0 : i32
    return %c0_i32, %arg0 : i32, i32
  }
  func.func @transform_11(%arg0: i32) -> (i32, i32) {
    %c0_i32 = arith.constant 0 : i32
    %c0_i32_0 = arith.constant 0 : i32
    return %c0_i32, %arg0 : i32, i32
  }
}

</mosaic_0001>

<bundles_post_ra>
// kernel: _lambda_.1
= control target key start
LH: loop header
LB: loop body
LE: loop exit
PB: predicated region body
PF: predicated region fallthrough
CT: control target
= control target key end

     0   :  { %s4634_s17 = smov 0   ;;  %s4636_s18 = smov 0   ;;  %s5902_s0 = inlined_call_operand.vmem [shape: f32[1200,24], index: 0, kind: input, shape index: {}]   ;;  %s5903_s1 = inlined_call_operand.vmem [shape: f32[1200,16], index: 1, kind: input, shape index: {}]   ;;  %s5904_s2 = inlined_call_operand.vmem [shape: f32[24,24], index: 2, kind: input, shape index: {}]   ;;  %s5905_s3 = inlined_call_operand.vmem [shape: f32[16,8], index: 3, kind: input, shape index: {}]   ;;  %s5906_s4 = inlined_call_operand.vmem [shape: f32[16,16], index: 4, kind: input, shape index: {}]   ;;  %s5907_s5 = inlined_call_operand.vmem [shape: f32[24,24], index: 5, kind: input, shape index: {}]   ;;  %s5908_s6 = inlined_call_operand.vmem [shape: f32[8,8], index: 6, kind: input, shape index: {}]   ;;  %s5909_s7 = inlined_call_operand.vmem [shape: f32[8,16], index: 7, kind: input, shape index: {}]   ;;  %s5910_s8 = inlined_call_operand.vmem [shape: f32[8,1], index: 8, kind: input, shape index: {}]   ;;  %s5911_s9 = inlined_call_operand.vmem [shape: f32[24,24], index: 9, kind: input, shape index: {}]   ;;  %s5912_s10 = inlined_call_operand.vmem [shape: f32[16,1200], index: 10, kind: output, shape index: {0}]   ;;  %s5913_s11 = inlined_call_operand.vmem [shape: f32[24,1200], index: 11, kind: output, shape index: {1}]  }
   0x1   :  { %s4638_s19 = smov 0  }
   0x2 LB: > { %s4647_s20 = sadd.s32 4294967295, %s4568_s19   ;;  %s4649_s21 = sadd.s32 1, %s4568_s19   ;;  %s4568_s19 = sphi %s4638_s19, %s5950_s19   ;;  %s4564_s18 = sphi %s4636_s18, %s5949_s18   ;;  %s4560_s17 = sphi %s4634_s17, %s5948_s17  }
   0x3   : > { %s246_s22 = ssub.s32 %s4568_s19, %s4649_s21  ;;  %s249_s23 = sadd.s32 1, %s4564_s18 }
   0x4   : > { %p247_p0 = scmp.eq.s32.totalorder %s246_s22, 0  ;;  %p259_p1 = scmp.ne.s32.totalorder %s4564_s18, %s4560_s17 }
   0x5   : > { %p260_p2 = scmp.eq.s32.totalorder %s4647_s20, 1  ;;  %p3302_p3 = scmp.ge.s32.totalorder %s4568_s19, 1 }
   0x6   : > { %s4657_s24 = scalar_select %p247_p0, %s4564_s18, %s249_s23  }
   0x7   : > { %p4659_p4 = por %p260_p2, %p259_p1  ;;  %p368_p5 = scmp.lt.s32.totalorder %s4568_s19, 3 }
   0x9   : > { %p369_p6 = pnand %p3302_p3, %p368_p5 }
   0xb   : > { %372 = sbr.rel (%p369_p6) target bundleno = 1017 (0x3f9), region = 60 }
  0x12   : > { %s424_s26 = smul.u32 80, %s4647_s20  ;;  %vm617_vm0 = vcmask 195584   ;;  %v4667_v0 = vld [vmem:[%s5904_s2] sm:$0xff]  ;;  %vm1177_vm2 = vcmask 130048   ;;  %vm4571_vm4 = vmmov 0   ;;  %vm1653_vm5 = vcmask 64512  }
  0x13   : > { %3633 = vmatprep.mubr.msk.f32.mxu0 %vm617_vm0, %v4667_v0  ;;  %3671 = vmatprep.mubr.msk.f32.mxu1 %vm617_vm0, %v4667_v0  ;;  %vm4685_vm1 = vmpackc.low %vm617_vm0, %vm617_vm0  ;;  %s415_s15 = sand.u32 1, %s4560_s17   ;;  %s3599_s12 = smul.u32 (%p4659_p4), 40, %s4647_s20 }
  0x14   : > { %p429_p7 = scmp.lt.s32.totalorder %s424_s26, 149  ;;  %vm4826_vm3 = vmpackc.low %vm1177_vm2, %vm1177_vm2  ;;  %s5758_s30 = smul.u32 120, %s415_s15 }
  0x16   : > { %s5952_s26 = smov (!%p429_p7, %s424_s26), 149  ;;  %s5795_s17 = scalar_lea.vmem [#allocation3], %s5758_s30 }
  0x17   : > { %s3303_s29 = sshll.u32 %s5952_s26, 3 }
  0x18   : > { %s4681_s13 = scalar_lea.vmem %s5902_s0, %s3303_s29  ;;  %s4806_s16 = scalar_lea.vmem %s5903_s1, %s3303_s29 }
  0x19   : > { %v470_v2 = vld [vmem:[%s4681_s13 + $0x80] sm:$0xff]  ;;  %v471_v3 = vld [vmem:[%s4681_s13 + $0x88] sm:$0xff]  ;;  %v472_v13 = vld [vmem:[%s4681_s13 + $0x90] sm:$0xff] }
  0x1a   : > { %v454_v4 = vld [vmem:[%s4681_s13] sm:$0xff]  ;;  %v4039_v5 = vpack.c.bf16 %v471_v3, %v470_v2  ;;  %v455_v6 = vld [vmem:[%s4681_s13 + $0x8] sm:$0xff]  ;;  %v473_v15 = vld [vmem:[%s4681_s13 + $0x98] sm:$0xff] }
  0x1b   : > { %v502_v7 = vld [vmem:[%s4681_s13 + $0x180] sm:$0xff]  ;;  %v503_v8 = vld [vmem:[%s4681_s13 + $0x188] sm:$0xff]  ;;  %v4042_v9 = vpack.c.bf16 %v455_v6, %v454_v4  ;;  %v4045_v16 = vpack.c.bf16 %v473_v15, %v472_v13  ;;  %v504_v17 = vld [vmem:[%s4681_s13 + $0x190] sm:$0xff] }
  0x1c   : > { %v4087_v10 = vpack.c.bf16 %v503_v8, %v502_v7  ;;  %v486_v11 = vld [vmem:[%s4681_s13 + $0x100] sm:$0xff]  ;;  %v487_v12 = vld [vmem:[%s4681_s13 + $0x108] sm:$0xff]  ;;  %4041 = vmatprep.subr.msk.bf16.mxu0 %vm4685_vm1, %v4039_v5  ;;  %v505_v18 = vld [vmem:[%s4681_s13 + $0x198] sm:$0xff] }
  0x1d   : > { %v4090_v14 = vpack.c.bf16 %v487_v12, %v486_v11  ;;  %4044 = vmatpush3.bf16.xpose.msk.msra.mxu0 %vm4685_vm1, %v4042_v9  ;;  %v456_v19 = vld [vmem:[%s4681_s13 + $0x10] sm:$0xff]  ;;  %v457_v20 = vld [vmem:[%s4681_s13 + $0x18] sm:$0xff]  ;;  %v4093_v21 = vpack.c.bf16 %v505_v18, %v504_v17  ;;  %v474_v24 = vld [vmem:[%s4681_s13 + $0xa0] sm:$0xff] }
  0x1e   : > { %4089 = vmatprep.subr.msk.bf16.mxu1 %vm4685_vm1, %v4087_v10  ;;  %v488_v22 = vld [vmem:[%s4681_s13 + $0x110] sm:$0xff]  ;;  %4047 = vmatprep.subr.msk.bf16.mxu0 %vm4685_vm1, %v4045_v16  ;;  %v489_v23 = vld [vmem:[%s4681_s13 + $0x118] sm:$0xff]  ;;  %v475_v25 = vld [vmem:[%s4681_s13 + $0xa8] sm:$0xff]  ;;  %v4048_v28 = vpack.c.bf16 %v457_v20, %v456_v19 }
  0x1f   : > { %4092 = vmatpush3.bf16.xpose.msk.msra.mxu1 %vm4685_vm1, %v4090_v14  ;;  %v506_v26 = vld [vmem:[%s4681_s13 + $0x1a0] sm:$0xff]  ;;  %v507_v27 = vld [vmem:[%s4681_s13 + $0x1a8] sm:$0xff]  ;;  %v4096_v29 = vpack.c.bf16 %v489_v23, %v488_v22  ;;  %v4051_v30 = vpack.c.bf16 %v475_v25, %v474_v24  ;;  %v476_v36 = vld [vmem:[%s4681_s13 + $0xb0] sm:$0xff] }
  0x20   : > { %4095 = vmatprep.subr.msk.bf16.mxu1 %vm4685_vm1, %v4093_v21  ;;  %v4099_v31 = vpack.c.bf16 %v507_v27, %v506_v26  ;;  %v458_v32 = vld [vmem:[%s4681_s13 + $0x20] sm:$0xff]  ;;  %v459_v33 = vld [vmem:[%s4681_s13 + $0x28] sm:$0xff]  ;;  %v477_v37 = vld [vmem:[%s4681_s13 + $0xb8] sm:$0xff] }
  0x21   : > { %v490_v34 = vld [vmem:[%s4681_s13 + $0x120] sm:$0xff]  ;;  %v491_v35 = vld [vmem:[%s4681_s13 + $0x128] sm:$0xff]  ;;  %v508_v38 = vld [vmem:[%s4681_s13 + $0x1b0] sm:$0xff]  ;;  %v4054_v40 = vpack.c.bf16 %v459_v33, %v458_v32  ;;  %v4057_v42 = vpack.c.bf16 %v477_v37, %v476_v36 }
  0x22   : > { %v509_v39 = vld [vmem:[%s4681_s13 + $0x1b8] sm:$0xff]  ;;  %v4102_v41 = vpack.c.bf16 %v491_v35, %v490_v34  ;;  %v460_v44 = vld [vmem:[%s4681_s13 + $0x30] sm:$0xff]  ;;  %v478_v48 = vld [vmem:[%s4681_s13 + $0xc0] sm:$0xff] }
  0x23   : > { %v4105_v43 = vpack.c.bf16 %v509_v39, %v508_v38  ;;  %v461_v45 = vld [vmem:[%s4681_s13 + $0x38] sm:$0xff]  ;;  %v492_v46 = vld [vmem:[%s4681_s13 + $0x130] sm:$0xff]  ;;  %v479_v49 = vld [vmem:[%s4681_s13 + $0xc8] sm:$0xff] }
  0x24   : > { %v493_v47 = vld [vmem:[%s4681_s13 + $0x138] sm:$0xff]  ;;  %v510_v50 = vld [vmem:[%s4681_s13 + $0x1c0] sm:$0xff]  ;;  %v511_v51 = vld [vmem:[%s4681_s13 + $0x1c8] sm:$0xff]  ;;  %v4060_v52 = vpack.c.bf16 %v461_v45, %v460_v44  ;;  %v4063_v54 = vpack.c.bf16 %v479_v49, %v478_v48 }
  0x25   : > { %4050 = vmatpush3.bf16.xpose.msk.msra.mxu0 %vm4685_vm1, %v4048_v28  ;;  %v4108_v53 = vpack.c.bf16 %v493_v47, %v492_v46  ;;  %v4111_v55 = vpack.c.bf16 %v511_v51, %v510_v50  ;;  %v462_v56 = vld [vmem:[%s4681_s13 + $0x40] sm:$0xff]  ;;  %v463_v57 = vld [vmem:[%s4681_s13 + $0x48] sm:$0xff]  ;;  %v480_v60 = vld [vmem:[%s4681_s13 + $0xd0] sm:$0xff] }
  0x26   : > { %4053 = vmatprep.subr.msk.bf16.mxu0 %vm4685_vm1, %v4051_v30  ;;  %v494_v58 = vld [vmem:[%s4681_s13 + $0x140] sm:$0xff]  ;;  %v495_v59 = vld [vmem:[%s4681_s13 + $0x148] sm:$0xff]  ;;  %v481_v61 = vld [vmem:[%s4681_s13 + $0xd8] sm:$0xff]  ;;  %v4066_v2 = vpack.c.bf16 %v463_v57, %v462_v56 }
  0x27   : > { %4098 = vmatpush3.bf16.xpose.msk.msra.mxu1 %vm4685_vm1, %v4096_v29  ;;  %v512_v62 = vld [vmem:[%s4681_s13 + $0x1d0] sm:$0xff]  ;;  %v513_v63 = vld [vmem:[%s4681_s13 + $0x1d8] sm:$0xff]  ;;  %v4114_v3 = vpack.c.bf16 %v495_v59, %v494_v58  ;;  %v4069_v4 = vpack.c.bf16 %v481_v61, %v480_v60  ;;  %v482_v10 = vld [vmem:[%s4681_s13 + $0xe0] sm:$0xff] }
  0x28   : > { %4101 = vmatprep.subr.msk.bf16.mxu1 %vm4685_vm1, %v4099_v31  ;;  %v4117_v5 = vpack.c.bf16 %v513_v63, %v512_v62  ;;  %v464_v6 = vld [vmem:[%s4681_s13 + $0x50] sm:$0xff]  ;;  %v465_v7 = vld [vmem:[%s4681_s13 + $0x58] sm:$0xff]  ;;  %v483_v11 = vld [vmem:[%s4681_s13 + $0xe8] sm:$0xff]  ;;  %v5916_v62 = vmov 0.0  }
  0x29   : > { %v496_v8 = vld [vmem:[%s4681_s13 + $0x150] sm:$0xff]  ;;  %v497_v9 = vld [vmem:[%s4681_s13 + $0x158] sm:$0xff]  ;;  %v514_v12 = vld [vmem:[%s4681_s13 + $0x1e0] sm:$0xff]  ;;  %v4072_v14 = vpack.c.bf16 %v465_v7, %v464_v6  ;;  %v4075_v16 = vpack.c.bf16 %v483_v11, %v482_v10 }
  0x2a   : > { %v515_v13 = vld [vmem:[%s4681_s13 + $0x1e8] sm:$0xff]  ;;  %v4120_v15 = vpack.c.bf16 %v497_v9, %v496_v8  ;;  %v466_v18 = vld [vmem:[%s4681_s13 + $0x60] sm:$0xff]  ;;  %v484_v22 = vld [vmem:[%s4681_s13 + $0xf0] sm:$0xff] }
  0x2b   : > { %v4123_v17 = vpack.c.bf16 %v515_v13, %v514_v12  ;;  %v467_v19 = vld [vmem:[%s4681_s13 + $0x68] sm:$0xff]  ;;  %v498_v20 = vld [vmem:[%s4681_s13 + $0x160] sm:$0xff]  ;;  %v485_v23 = vld [vmem:[%s4681_s13 + $0xf8] sm:$0xff] }
  0x2c   : > { %v499_v21 = vld [vmem:[%s4681_s13 + $0x168] sm:$0xff]  ;;  %v516_v24 = vld [vmem:[%s4681_s13 + $0x1f0] sm:$0xff]  ;;  %v517_v25 = vld [vmem:[%s4681_s13 + $0x1f8] sm:$0xff]  ;;  %v4078_v26 = vpack.c.bf16 %v467_v19, %v466_v18  ;;  %v4081_v28 = vpack.c.bf16 %v485_v23, %v484_v22 }
  0x2d   : > { %4056 = vmatpush3.bf16.xpose.msk.msra.mxu0 %vm4685_vm1, %v4054_v40  ;;  %v4126_v27 = vpack.c.bf16 %v499_v21, %v498_v20  ;;  %v4129_v29 = vpack.c.bf16 %v517_v25, %v516_v24  ;;  %v468_v30 = vld [vmem:[%s4681_s13 + $0x70] sm:$0xff]  ;;  %v469_v31 = vld [vmem:[%s4681_s13 + $0x78] sm:$0xff]  ;;  %v550_v34 = vld [vmem:[%s4806_s16 + $0x80] sm:$0xff]  ;;  %v5914_v40 = vmov 0.0|0.0  }
  0x2e   : > { %4059 = vmatprep.subr.msk.bf16.mxu0 %vm4685_vm1, %v4057_v42  ;;  %v500_v32 = vld [vmem:[%s4681_s13 + $0x170] sm:$0xff]  ;;  %v501_v33 = vld [vmem:[%s4681_s13 + $0x178] sm:$0xff]  ;;  %v551_v35 = vld [vmem:[%s4806_s16 + $0x88] sm:$0xff]  ;;  %v4084_v36 = vpack.c.bf16 %v469_v31, %v468_v30 }
  0x2f   : > { %4104 = vmatpush3.bf16.xpose.msk.msra.mxu1 %vm4685_vm1, %v4102_v41  ;;  %v4132_v37 = vpack.c.bf16 %v501_v33, %v500_v32  ;;  %v4822_v38 = vpack.c.bf16 %v551_v35, %v550_v34  ;;  %v518_v41 = vld [vmem:[%s4681_s13 + $0x200] sm:$0xff]  ;;  %v519_v42 = vld [vmem:[%s4681_s13 + $0x208] sm:$0xff]  ;;  %v552_v46 = vld [vmem:[%s4806_s16 + $0x90] sm:$0xff] }
  0x30   : > { %4107 = vmatprep.subr.msk.bf16.mxu1 %vm4685_vm1, %v4105_v43  ;;  %v534_v43 = vld [vmem:[%s4806_s16] sm:$0xff]  ;;  %v535_v44 = vld [vmem:[%s4806_s16 + $0x8] sm:$0xff]  ;;  %v4136_v45 = vpack.c.bf16 %v519_v42, %v518_v41  ;;  %v553_v47 = vld [vmem:[%s4806_s16 + $0x98] sm:$0xff] }
  0x31   : > { %v4847_v48 = vld [vmem:[%s5904_s2 + $0x8] sm:$0xff]  ;;  %v4849_v49 = vpack.c.bf16 %v535_v44, %v534_v43  ;;  %v4853_v50 = vpack.c.bf16 %v553_v47, %v552_v46  ;;  %v4864_v51 = vld [vmem:[%s5904_s2 + $0x10] sm:$0xff]  ;;  %v554_v57 = vld [vmem:[%s4806_s16 + $0xa0] sm:$0xff] }
  0x32   : > { %v555_v58 = vld [vmem:[%s4806_s16 + $0xa8] sm:$0xff]  ;;  %v4898_v61 = vld [vmem:[%s5906_s4] sm:$0xff]  ;;  %v556_v6 = vld [vmem:[%s4806_s16 + $0xb0] sm:$0xff] }
  0x33   : > { %v4893_v60 = vpack.c.bf16 %v555_v58, %v554_v57  ;;  %v522_v63 = vld [vmem:[%s4681_s13 + $0x220] sm:$0xff]  ;;  %v557_v7 = vld [vmem:[%s4806_s16 + $0xb8] sm:$0xff]  ;;  %v524_v10 = vld [vmem:[%s4681_s13 + $0x230] sm:$0xff] }
  0x34   : > { %v4923_v9 = vpack.c.bf16 %v557_v7, %v556_v6  ;;  %v525_v11 = vld [vmem:[%s4681_s13 + $0x238] sm:$0xff]  ;;  %v540_v12 = vld [vmem:[%s4806_s16 + $0x30] sm:$0xff]  ;;  %v526_v19 = vld [vmem:[%s4681_s13 + $0x240] sm:$0xff] }
  0x35   : > { %4062 = vmatpush3.bf16.xpose.msk.msra.mxu0 %vm4685_vm1, %v4060_v52  ;;  %v520_v52 = vld [vmem:[%s4681_s13 + $0x210] sm:$0xff]  ;;  %v541_v13 = vld [vmem:[%s4806_s16 + $0x38] sm:$0xff]  ;;  %v527_v20 = vld [vmem:[%s4681_s13 + $0x248] sm:$0xff] }
  0x36   : > { %4065 = vmatprep.subr.msk.bf16.mxu0 %vm4685_vm1, %v4063_v54  ;;  %v536_v54 = vld [vmem:[%s4806_s16 + $0x10] sm:$0xff]  ;;  %v542_v21 = vld [vmem:[%s4806_s16 + $0x40] sm:$0xff]  ;;  %v543_v22 = vld [vmem:[%s4806_s16 + $0x48] sm:$0xff]  ;;  %v4152_v23 = vpack.c.bf16 %v527_v20, %v526_v19 }
  0x37   : > { %4110 = vmatpush3.bf16.xpose.msk.msra.mxu1 %vm4685_vm1, %v4108_v53  ;;  %v521_v53 = vld [vmem:[%s4681_s13 + $0x218] sm:$0xff]  ;;  %v560_v24 = vld [vmem:[%s4806_s16 + $0xd0] sm:$0xff]  ;;  %v562_v33 = vld [vmem:[%s4806_s16 + $0xe0] sm:$0xff] }
  0x38   : > { %4113 = vmatprep.subr.msk.bf16.mxu1 %vm4685_vm1, %v4111_v55  ;;  %v537_v55 = vld [vmem:[%s4806_s16 + $0x18] sm:$0xff]  ;;  %v4140_v56 = vpack.c.bf16 %v521_v53, %v520_v52  ;;  %v544_v30 = vld [vmem:[%s4806_s16 + $0x50] sm:$0xff]  ;;  %v563_v34 = vld [vmem:[%s4806_s16 + $0xe8] sm:$0xff] }
  0x39   : > { %v4889_v59 = vpack.c.bf16 %v537_v55, %v536_v54  ;;  %v561_v25 = vld [vmem:[%s4806_s16 + $0xd8] sm:$0xff]  ;;  %v531_v41 = vld [vmem:[%s4681_s13 + $0x268] sm:$0xff]  ;;  %v546_v42 = vld [vmem:[%s4806_s16 + $0x60] sm:$0xff] }
  0x3a   : > { %v545_v31 = vld [vmem:[%s4806_s16 + $0x58] sm:$0xff]  ;;  %v547_v43 = vld [vmem:[%s4806_s16 + $0x68] sm:$0xff]  ;;  %v532_v53 = vld [vmem:[%s4681_s13 + $0x270] sm:$0xff] }
  0x3b   : > { %v4978_v35 = vpack.c.bf16 %v545_v31, %v544_v30  ;;  %v565_v46 = vld [vmem:[%s4806_s16 + $0xf8] sm:$0xff]  ;;  %v4997_v47 = vpack.c.bf16 %v547_v43, %v546_v42  ;;  %v582_v55 = vld [vmem:[%s4806_s16 + $0x180] sm:$0xff]  ;;  %v548_v57 = vld [vmem:[%s4806_s16 + $0x70] sm:$0xff] }
  0x3c   : > { %v533_v54 = vld [vmem:[%s4681_s13 + $0x278] sm:$0xff]  ;;  %v566_v7 = vld [vmem:[%s4806_s16 + $0x100] sm:$0xff]  ;;  %v568_v19 = vld [vmem:[%s4806_s16 + $0x110] sm:$0xff] }
  0x3d   : > { %4068 = vmatpush3.bf16.xpose.msk.msra.mxu0 %vm4685_vm1, %v4066_v2  ;;  %v523_v2 = vld [vmem:[%s4681_s13 + $0x228] sm:$0xff]  ;;  %v549_v58 = vld [vmem:[%s4806_s16 + $0x78] sm:$0xff]  ;;  %v590_v43 = vld [vmem:[%s4806_s16 + $0x1c0] sm:$0xff] }
  0x3e   : > { %4071 = vmatprep.subr.msk.bf16.mxu0 %vm4685_vm1, %v4069_v4  ;;  %v539_v4 = vld [vmem:[%s4806_s16 + $0x28] sm:$0xff]  ;;  %v569_v20 = vld [vmem:[%s4806_s16 + $0x118] sm:$0xff] }
  0x3f   : > { %4116 = vmatpush3.bf16.xpose.msk.msra.mxu1 %vm4685_vm1, %v4114_v3  ;;  %v538_v3 = vld [vmem:[%s4806_s16 + $0x20] sm:$0xff]  ;;  %v589_v30 = vld [vmem:[%s4806_s16 + $0x1b8] sm:$0xff] }
  0x40   : > { %4119 = vmatprep.subr.msk.bf16.mxu1 %vm4685_vm1, %v4117_v5  ;;  %v4144_v5 = vpack.c.bf16 %v523_v2, %v522_v63  ;;  %v4921_v8 = vpack.c.bf16 %v539_v4, %v538_v3  ;;  %v4164_v63 = vpack.c.bf16 %v533_v54, %v532_v53  ;;  %v598_v2 = vld [vmem:[%s4806_s16 + $0x200] sm:$0xff]  ;;  %v599_v3 = vld [vmem:[%s4806_s16 + $0x208] sm:$0xff]  ;;  %v573_v42 = vld [vmem:[%s4806_s16 + $0x138] sm:$0xff] }
  0x41   : > { %v5022_v6 = vpack.c.bf16 %v599_v3, %v598_v2  ;;  %v607_v53 = vld [vmem:[%s4806_s16 + $0x248] sm:$0xff]  ;;  %v608_v3 = vld [vmem:[%s4806_s16 + $0x250] sm:$0xff] }
  0x45   : > { %4074 = vmatpush3.bf16.xpose.msk.msra.mxu0 %vm4685_vm1, %v4072_v14  ;;  %v4148_v14 = vpack.c.bf16 %v525_v11, %v524_v10  ;;  %v567_v10 = vld [vmem:[%s4806_s16 + $0x108] sm:$0xff]  ;;  %v584_v11 = vld [vmem:[%s4806_s16 + $0x190] sm:$0xff] }
  0x46   : > { %4077 = vmatprep.subr.msk.bf16.mxu0 %vm4685_vm1, %v4075_v16  ;;  %v559_v16 = vld [vmem:[%s4806_s16 + $0xc8] sm:$0xff]  ;;  %v5039_v1 = vpack.c.bf16 %v567_v10, %v566_v7  ;;  %v609_v7 = vld [vmem:[%s4806_s16 + $0x258] sm:$0xff] }
  0x47   : > { %4122 = vmatpush3.bf16.xpose.msk.msra.mxu1 %vm4685_vm1, %v4120_v15  ;;  %v558_v15 = vld [vmem:[%s4806_s16 + $0xc0] sm:$0xff] }
  0x48   : > { %4125 = vmatprep.subr.msk.bf16.mxu1 %vm4685_vm1, %v4123_v17  ;;  %v4940_v17 = vpack.c.bf16 %v541_v13, %v540_v12  ;;  %v4942_v18 = vpack.c.bf16 %v559_v16, %v558_v15  ;;  %v585_v12 = vld [vmem:[%s4806_s16 + $0x198] sm:$0xff]  ;;  %v600_v13 = vld [vmem:[%s4806_s16 + $0x210] sm:$0xff] }
  0x49   : > { %v5043_v15 = vpack.c.bf16 %v585_v12, %v584_v11  ;;  %v5155_v11 = vpack.c.bf16 %v609_v7, %v608_v3  ;;  %v1176_v12 = vld [vmem:[%s5906_s4 + $0x8] sm:$0xff] }
  0x4d   : > { %4080 = vmatpush3.bf16.xpose.msk.msra.mxu0 %vm4685_vm1, %v4078_v26  ;;  %v4959_v26 = vpack.c.bf16 %v543_v22, %v542_v21  ;;  %v587_v21 = vld [vmem:[%s4806_s16 + $0x1a8] sm:$0xff]  ;;  %v5073_v22 = vpack.c.bf16 %v569_v20, %v568_v19  ;;  %v594_v19 = vld [vmem:[%s4806_s16 + $0x1e0] sm:$0xff] }
  0x4e   : > { %4083 = vmatprep.subr.msk.bf16.mxu0 %vm4685_vm1, %v4081_v28  ;;  %v528_v28 = vld [vmem:[%s4681_s13 + $0x250] sm:$0xff]  ;;  %v595_v20 = vld [vmem:[%s4806_s16 + $0x1e8] sm:$0xff] }
  0x4f   : > { %4128 = vmatpush3.bf16.xpose.msk.msra.mxu1 %vm4685_vm1, %v4126_v27  ;;  %v4961_v27 = vpack.c.bf16 %v561_v25, %v560_v24  ;;  %v603_v24 = vld [vmem:[%s4806_s16 + $0x228] sm:$0xff] }
  0x50   : > { %4131 = vmatprep.subr.msk.bf16.mxu1 %vm4685_vm1, %v4129_v29  ;;  %v529_v29 = vld [vmem:[%s4681_s13 + $0x258] sm:$0xff] }
  0x51   : > { %v4156_v32 = vpack.c.bf16 %v529_v29, %v528_v28  ;;  %v570_v28 = vld [vmem:[%s4806_s16 + $0x120] sm:$0xff]  ;;  %v571_v29 = vld [vmem:[%s4806_s16 + $0x128] sm:$0xff] }
  0x52   : > { %v5101_v31 = vpack.c.bf16 %v571_v29, %v570_v28  ;;  %v578_v29 = vld [vmem:[%s4806_s16 + $0x160] sm:$0xff] }
  0x55   : > { %4086 = vmatpush3.bf16.xpose.msk.msra.mxu0 %vm4685_vm1, %v4084_v36  ;;  %v4980_v36 = vpack.c.bf16 %v563_v34, %v562_v33  ;;  %v605_v33 = vld [vmem:[%s4806_s16 + $0x238] sm:$0xff] }
  0x56   : > { %4135 = vmatprep.subr.bf16.mxu0 %v5914_v40 }
  0x57   : > { %4134 = vmatpush3.bf16.xpose.msk.msra.mxu1 %vm4685_vm1, %v4132_v37  ;;  %v530_v37 = vld [vmem:[%s4681_s13 + $0x260] sm:$0xff] }
  0x58   : > { %4169 = vmatprep.subr.msk.bf16.mxu1 %vm4826_vm3, %v4822_v38  ;;  %v4160_v44 = vpack.c.bf16 %v531_v41, %v530_v37  ;;  %v572_v41 = vld [vmem:[%s4806_s16 + $0x130] sm:$0xff] }
  0x5c   : > { %3634 = vmatmul.mubr.msk.f32.vlgmr.msra.gmra.mrb[0].mxu0 %vm617_vm0, %v4667_v0 }
  0x5d   : > { %4138 = vmatpush3.bf16.xpose.msk.msra.mxu0 %vm4685_vm1, %v4136_v45  ;;  %3635 = vmatprep.mubr.msk.f32.mxu0 %vm617_vm0, %v4847_v48  ;;  %v564_v45 = vld [vmem:[%s4806_s16 + $0xf0] sm:$0xff] }
  0x5e   : > { %3672 = vmatmul.mubr.msk.f32.vlgmr.msra.gmra.mrb[0].mxu1 %vm617_vm0, %v4667_v0  ;;  %4139 = vmatprep.subr.bf16.mxu0 %v5914_v40  ;;  %v4999_v52 = vpack.c.bf16 %v565_v46, %v564_v45  ;;  %v5125_v45 = vpack.c.bf16 %v573_v42, %v572_v41  ;;  %v606_v46 = vld [vmem:[%s4806_s16 + $0x240] sm:$0xff]  ;;  %v612_v41 = vld [vmem:[%s4806_s16 + $0x270] sm:$0xff]  ;;  %v613_v42 = vld [vmem:[%s4806_s16 + $0x278] sm:$0xff] }
  0x5f   : > { %3673 = vmatprep.mubr.msk.f32.mxu1 %vm617_vm0, %v4847_v48  ;;  %4172 = vmatpush3.bf16.xpose.msk.msra.mxu1 %vm4826_vm3, %v4849_v49 }
  0x60   : > { %3636 = vmatmul.mubr.msk.f32.gmra.mrb[2].mxu0 %vm617_vm0, %v4847_v48  ;;  %4175 = vmatprep.subr.msk.bf16.mxu1 %vm4826_vm3, %v4853_v50 }
  0x61   : > { %3637 = vmatprep.mubr.msk.f32.mxu0 %vm617_vm0, %v4864_v51 }
  0x62   : > { %3674 = vmatmul.mubr.msk.f32.gmra.mrb[2].mxu1 %vm617_vm0, %v4847_v48 }
  0x63   : > { %3675 = vmatprep.mubr.msk.f32.mxu1 %vm617_vm0, %v4864_v51 }
  0x64   : > { %3638 = vmatmul.mubr.msk.f32.gmra.mrb[4].mxu0 %vm617_vm0, %v4864_v51 }
  0x65   : > { %4142 = vmatpush3.bf16.xpose.msk.msra.mxu0 %vm4685_vm1, %v4140_v56  ;;  %3920 = vmatprep.mubr.msk.f32.mxu0 %vm4571_vm4, %v5916_v62  ;;  %v583_v56 = vld [vmem:[%s4806_s16 + $0x188] sm:$0xff] }
  0x66   : > { %3676 = vmatmul.mubr.msk.f32.gmra.mrb[4].mxu1 %vm617_vm0, %v4864_v51  ;;  %4143 = vmatprep.subr.bf16.mxu0 %v5914_v40  ;;  %v5018_v4 = vpack.c.bf16 %v583_v56, %v582_v55  ;;  %v5131_v55 = vpack.c.bf16 %v607_v53, %v606_v46  ;;  %v574_v56 = vld [vmem:[%s4806_s16 + $0x140] sm:$0xff]  ;;  %v580_v46 = vld [vmem:[%s4806_s16 + $0x170] sm:$0xff]  ;;  %v581_v53 = vld [vmem:[%s4806_s16 + $0x178] sm:$0xff] }
  0x67   : > { %4178 = vmatpush3.bf16.xpose.msk.msra.mxu1 %vm4826_vm3, %v4889_v59  ;;  %3728 = vmatprep.mubr.msk.f32.mxu1 %vm1177_vm2, %v4898_v61 }
  0x68   : > { %4181 = vmatprep.subr.msk.bf16.mxu1 %vm4826_vm3, %v4893_v60 }
  0x6d   : > { %4146 = vmatpush3.bf16.xpose.msk.msra.mxu0 %vm4685_vm1, %v4144_v5  ;;  %v5020_v5 = vpack.c.bf16 %v549_v58, %v548_v57  ;;  %v575_v57 = vld [vmem:[%s4806_s16 + $0x148] sm:$0xff]  ;;  %v592_v58 = vld [vmem:[%s4806_s16 + $0x1d0] sm:$0xff] }
  0x6e   : > { %4147 = vmatprep.subr.bf16.mxu0 %v5914_v40  ;;  %v5149_v2 = vpack.c.bf16 %v575_v57, %v574_v56  ;;  %v5226_v56 = vpack.c.bf16 %v581_v53, %v580_v46 }
  0x6f   : > { %4184 = vmatpush3.bf16.xpose.msk.msra.mxu1 %vm4826_vm3, %v4921_v8 }
  0x70   : > { %4187 = vmatprep.subr.msk.bf16.mxu1 %vm4826_vm3, %v4923_v9  ;;  %5936 = vst [vmem:[#allocation10_spill] sm:$0xff] %v5226_v56 }
  0x75   : > { %4150 = vmatpush3.bf16.xpose.msk.msra.mxu0 %vm4685_vm1, %v4148_v14  ;;  %v601_v14 = vld [vmem:[%s4806_s16 + $0x218] sm:$0xff] }
  0x76   : > { %4151 = vmatprep.subr.bf16.mxu0 %v5914_v40  ;;  %v5047_v16 = vpack.c.bf16 %v601_v14, %v600_v13  ;;  %v576_v13 = vld [vmem:[%s4806_s16 + $0x150] sm:$0xff]  ;;  %v577_v14 = vld [vmem:[%s4806_s16 + $0x158] sm:$0xff] }
  0x77   : > { %4190 = vmatpush3.bf16.xpose.msk.msra.mxu1 %vm4826_vm3, %v4940_v17 }
  0x78   : > { %4193 = vmatprep.subr.msk.bf16.mxu1 %vm4826_vm3, %v4942_v18 }
  0x7d   : > { %4154 = vmatpush3.bf16.xpose.msk.msra.mxu0 %vm4685_vm1, %v4152_v23  ;;  %v602_v23 = vld [vmem:[%s4806_s16 + $0x220] sm:$0xff] }
  0x7e   : > { %4155 = vmatprep.subr.bf16.mxu0 %v5914_v40 }
  0x7f   : > { %4196 = vmatpush3.bf16.xpose.msk.msra.mxu1 %vm4826_vm3, %v4959_v26 }
  0x80   : > { %4199 = vmatprep.subr.msk.bf16.mxu1 %vm4826_vm3, %v4961_v27 }
  0x85   : > { %4158 = vmatpush3.bf16.xpose.msk.msra.mxu0 %vm4685_vm1, %v4156_v32  ;;  %v604_v32 = vld [vmem:[%s4806_s16 + $0x230] sm:$0xff] }
  0x86   : > { %4159 = vmatprep.subr.bf16.mxu0 %v5914_v40  ;;  %v5107_v37 = vpack.c.bf16 %v605_v33, %v604_v32  ;;  %v597_v32 = vld [vmem:[%s4806_s16 + $0x1f8] sm:$0xff] }
  0x87   : > { %4202 = vmatpush3.bf16.xpose.msk.msra.mxu1 %vm4826_vm3, %v4978_v35 }
  0x88   : > { %4205 = vmatprep.subr.msk.bf16.mxu1 %vm4826_vm3, %v4980_v36 }
  0x8d   : > { %4162 = vmatpush3.bf16.xpose.msk.msra.mxu0 %vm4685_vm1, %v4160_v44  ;;  %v591_v44 = vld [vmem:[%s4806_s16 + $0x1c8] sm:$0xff] }
  0x8e   : > { %4163 = vmatprep.subr.bf16.mxu0 %v5914_v40  ;;  %v5129_v54 = vpack.c.bf16 %v591_v44, %v590_v43  ;;  %v5210_v44 = vpack.c.bf16 %v613_v42, %v612_v41 }
  0x8f   : > { %4208 = vmatpush3.bf16.xpose.msk.msra.mxu1 %vm4826_vm3, %v4997_v47 }
  0x90   : > { %4211 = vmatprep.subr.msk.bf16.mxu1 %vm4826_vm3, %v4999_v52  ;;  %5935 = vst [vmem:[#allocation9_spill] sm:$0xff] %v5210_v44 }
  0x95   : > { %4166 = vmatpush3.bf16.xpose.msk.msra.mxu0 %vm4685_vm1, %v4164_v63  ;;  %v593_v63 = vld [vmem:[%s4806_s16 + $0x1d8] sm:$0xff] }
  0x96   : > { %4217 = vmatprep.subr.msk.bf16.mxu0 %vm4826_vm3, %v5018_v4  ;;  %v5153_v10 = vpack.c.bf16 %v593_v63, %v592_v58 }
  0x97   : > { %4214 = vmatpush3.bf16.xpose.msk.msra.mxu1 %vm4826_vm3, %v5020_v5 }
  0x98   : > { %4265 = vmatprep.subr.msk.bf16.mxu1 %vm4826_vm3, %v5022_v6 }
  0x9c   : > { %3921 = vmatmul.mubr.msk.f32.vlgmr.msra.gmra.mrb[6].mxu0 %vm617_vm0, %v4667_v0  ;;  %v586_v0 = vld [vmem:[%s4806_s16 + $0x1a0] sm:$0xff] }
  0x9d   : > { %3923 = vmatprep.mubr.msk.f32.mxu0 %vm4571_vm4, %v5916_v62  ;;  %4220 = vmatpush3.bf16.xpose.msk.msra.mxu0 %vm4826_vm3, %v5039_v1  ;;  %v5077_v25 = vpack.c.bf16 %v587_v21, %v586_v0  ;;  %v5178_v0 = vpack.c.bf16 %v577_v14, %v576_v13  ;;  %v610_v21 = vld [vmem:[%s4806_s16 + $0x260] sm:$0xff] }
  0x9e   : > { %3729 = vmatmul.mubr.msk.f32.vlgmr.msra.gmra.mrb[6].mxu1 %vm1177_vm2, %v4898_v61  ;;  %4223 = vmatprep.subr.msk.bf16.mxu0 %vm4826_vm3, %v5043_v15 }
  0x9f   : > { %4268 = vmatpush3.bf16.xpose.msk.msra.mxu1 %vm4826_vm3, %v5022_v6  ;;  %3730 = vmatprep.mubr.msk.f32.mxu1 %vm1177_vm2, %v1176_v12  ;;  %5930 = vst [vmem:[#allocation4_spill] sm:$0xff] %v5178_v0 }
  0xa0   : > { %3924 = vmatmul.mubr.msk.f32.gmra.mrb[8].mxu0 %vm617_vm0, %v4847_v48  ;;  %4271 = vmatprep.subr.msk.bf16.mxu1 %vm4826_vm3, %v5047_v16  ;;  %v5081_v48 = vpack.c.bf16 %v603_v24, %v602_v23  ;;  %v611_v23 = vld [vmem:[%s4806_s16 + $0x268] sm:$0xff]  ;;  %v5184_v24 = vpack.c.bf16 %v595_v20, %v594_v19 }
  0xa1   : > { %3926 = vmatprep.mubr.msk.f32.mxu0 %vm4571_vm4, %v5916_v62  ;;  %v5186_v28 = vpack.c.bf16 %v611_v23, %v610_v21 }
  0xa2   : > { %3731 = vmatmul.mubr.msk.f32.gmra.mrb[8].mxu1 %vm1177_vm2, %v1176_v12  ;;  %5931 = vst [vmem:[#allocation5_spill] sm:$0xff] %v5184_v24 }
  0xa3   : > { %3961 = vmatprep.mubr.msk.f32.mxu1 %vm1177_vm2, %v4898_v61  ;;  %5932 = vst [vmem:[#allocation6_spill] sm:$0xff] %v5186_v28 }
  0xa4   : > { %3927 = vmatmul.mubr.msk.f32.gmra.mrb[10].mxu0 %vm617_vm0, %v4864_v51  ;;  %v588_v51 = vld [vmem:[%s4806_s16 + $0x1b0] sm:$0xff] }
  0xa5   : > { %4226 = vmatpush3.bf16.xpose.msk.msra.mxu0 %vm4826_vm3, %v5073_v22  ;;  %3764 = vmatprep.mubr.msk.f32.mxu0 %vm1177_vm2, %v4898_v61  ;;  %v5105_v34 = vpack.c.bf16 %v589_v30, %v588_v51  ;;  %v579_v51 = vld [vmem:[%s4806_s16 + $0x168] sm:$0xff]  ;;  %v596_v30 = vld [vmem:[%s4806_s16 + $0x1f0] sm:$0xff]  ;;  %s4475_s16 = smul.u32 80, %s415_s15  ;;  %s3121_s15 = scalar_lea.vmem (%p4659_p4), %s5912_s10, %s3599_s12 }
  0xa6   : > { %4229 = vmatprep.subr.msk.bf16.mxu0 %vm4826_vm3, %v5077_v25  ;;  %v5204_v33 = vpack.c.bf16 %v579_v51, %v578_v29  ;;  %v5208_v43 = vpack.c.bf16 %v597_v32, %v596_v30 }
  0xa7   : > { %4274 = vmatpush3.bf16.xpose.msk.msra.mxu1 %vm4826_vm3, %v5047_v16  ;;  %s5537_s19 = scalar_lea.vmem [#allocation2], %s4475_s16 }
  0xa8   : > { %4277 = vmatprep.subr.msk.bf16.mxu1 %vm4826_vm3, %v5081_v48  ;;  %5933 = vst [vmem:[#allocation7_spill] sm:$0xff] %v5204_v33  ;;  %5934 = vst [vmem:[#allocation8_spill] sm:$0xff] %v5208_v43 }
  0xad   : > { %4232 = vmatpush3.bf16.xpose.msk.msra.mxu0 %vm4826_vm3, %v5101_v31 }
  0xae   : > { %4235 = vmatprep.subr.msk.bf16.mxu0 %vm4826_vm3, %v5105_v34 }
  0xaf   : > { %4280 = vmatpush3.bf16.xpose.msk.msra.mxu1 %vm4826_vm3, %v5081_v48 }
  0xb0   : > { %4283 = vmatprep.subr.msk.bf16.mxu1 %vm4826_vm3, %v5107_v37 }
  0xb5   : > { %4238 = vmatpush3.bf16.xpose.msk.msra.mxu0 %vm4826_vm3, %v5125_v45 }
  0xb6   : > { %4241 = vmatprep.subr.msk.bf16.mxu0 %vm4826_vm3, %v5129_v54 }
  0xb7   : > { %4286 = vmatpush3.bf16.xpose.msk.msra.mxu1 %vm4826_vm3, %v5107_v37 }
  0xb8   : > { %4289 = vmatprep.subr.msk.bf16.mxu1 %vm4826_vm3, %v5131_v55 }
  0xbd   : > { %4244 = vmatpush3.bf16.xpose.msk.msra.mxu0 %vm4826_vm3, %v5149_v2 }
  0xbe   : > { %4247 = vmatprep.subr.msk.bf16.mxu0 %vm4826_vm3, %v5153_v10 }
  0xbf   : > { %4292 = vmatpush3.bf16.xpose.msk.msra.mxu1 %vm4826_vm3, %v5131_v55 }
  0xc0   : > { %4295 = vmatprep.subr.msk.bf16.mxu1 %vm4826_vm3, %v5155_v11 }
  0xc5   : > { %4250 = vmatpush3.bf16.xpose.msk.msra.mxu0 %vm4826_vm3, %v5178_v0 }
  0xc6   : > { %4253 = vmatprep.subr.msk.bf16.mxu0 %vm4826_vm3, %v5184_v24 }
  0xc7   : > { %4298 = vmatpush3.bf16.xpose.msk.msra.mxu1 %vm4826_vm3, %v5155_v11 }
  0xc8   : > { %4301 = vmatprep.subr.msk.bf16.mxu1 %vm4826_vm3, %v5186_v28 }
  0xcd   : > { %4256 = vmatpush3.bf16.xpose.msk.msra.mxu0 %vm4826_vm3, %v5204_v33 }
  0xce   : > { %4259 = vmatprep.subr.msk.bf16.mxu0 %vm4826_vm3, %v5208_v43 }
  0xcf   : > { %4304 = vmatpush3.bf16.xpose.msk.msra.mxu1 %vm4826_vm3, %v5186_v28 }
  0xd0   : > { %4307 = vmatprep.subr.msk.bf16.mxu1 %vm4826_vm3, %v5210_v44 }
  0xd5   : > { %4262 = vmatpush3.bf16.xpose.msk.msra.mxu0 %vm4826_vm3, %v5226_v56 }
  0xd7   : > { %4310 = vmatpush3.bf16.xpose.msk.msra.mxu1 %vm4826_vm3, %v5210_v44 }
  0xdc   : > { %3765 = vmatmul.mubr.msk.f32.vlgmr.msra.gmra.mrb[12].mxu0 %vm1177_vm2, %v4898_v61 }
  0xdd   : > { %3766 = vmatprep.mubr.msk.f32.mxu0 %vm1177_vm2, %v1176_v12 }
  0xde   : > { %3962 = vmatmul.mubr.msk.f32.vlgmr.msra.gmra.mrb[10].mxu1 %vm1177_vm2, %v1176_v12 }
  0xdf   : > { %1724 = vmatprep.mubr.f32.mxu1 %v5916_v62 }
  0xe0   : > { %3767 = vmatmul.mubr.msk.f32.gmra.mrb[14].mxu0 %vm1177_vm2, %v1176_v12 }
  0xe1   : > { %1801 = vmatprep.mubr.f32.mxu0 %v5916_v62 }
 0x12f   : > { %v5241_v57 = vpop.f32.mrb[0].mxu0 }
 0x130   : > { %v5243_v58 = vpop.f32.mrb[1].mxu0  ;;  %v1113_v61 = vmul.f32 %v5241_v57, %v5241_v57 }
 0x131   : > { %v5245_v63 = vpop.f32.mrb[0].mxu1  ;;  %v1114_v20 = vmul.f32 %v5243_v58, %v5243_v58 }
 0x132   : > { %v5247_v3 = vpop.f32.mrb[1].mxu1  ;;  %v1115_v19 = vmul.f32 %v5245_v63, %v5245_v63 }
 0x133   : > { %v5249_v7 = vpop.f32.mrb[2].mxu0  ;;  %v1116_v29 = vmul.f32 %v5247_v3, %v5247_v3 }
 0x134   : > { %v1118_v13 = vmul.f32 %v5249_v7, %v5249_v7  ;;  %v5257_v14 = vpop.f32.mrb[3].mxu0 }
 0x135   : > { %v1119_v21 = vmul.f32 %v5257_v14, %v5257_v14  ;;  %v1022_v51 = vpop.f32.mrb[2].mxu1 }
 0x136   : > { %v1123_v30 = vadd.f32 %v1118_v13, %v1113_v61  ;;  %v1120_v32 = vmul.f32 %v1022_v51, %v1022_v51  ;;  %v4317_v41 = vpack.c.bf16 %v1022_v51, %v5245_v63  ;;  %v1024_v42 = vpop.f32.mrb[3].mxu1 }
 0x137   : > { %v1124_v46 = vadd.f32 %v1119_v21, %v1114_v20  ;;  %v5270_v53 = vpop.f32.mrb[4].mxu0  ;;  %v1121_v40 = vmul.f32 %v1024_v42, %v1024_v42  ;;  %v4315_v12 = vpack.c.bf16 %v1024_v42, %v5247_v3 }
 0x138   : > { %v1128_v62 = vmul.f32 %v5270_v53, %v5270_v53  ;;  %v5275_v56 = vpop.f32.mrb[5].mxu0  ;;  %v1125_v23 = vadd.f32 %v1120_v32, %v1115_v19 }
 0x139   : > { %v1129_v44 = vmul.f32 %v5275_v56, %v5275_v56  ;;  %v1126_v61 = vadd.f32 %v1121_v40, %v1116_v29  ;;  %v1028_v13 = vpop.f32.mrb[4].mxu1 }
 0x13a   : > { %v1133_v43 = vadd.f32 %v1128_v62, %v1123_v30  ;;  %v1130_v63 = vmul.f32 %v1028_v13, %v1028_v13  ;;  %v1030_v51 = vpop.f32.mrb[5].mxu1 }
 0x13b   : > { %v1134_v20 = vadd.f32 %v1129_v44, %v1124_v46  ;;  %v1131_v21 = vmul.f32 %v1030_v51, %v1030_v51 }
 0x13c   : > { %v1135_v33 = vadd.f32 %v1130_v63, %v1125_v23  ;;  %4506 = vrsqrt.f32 %v1133_v43  ;;  %vm1140_vm8 = vcmp.eq.f32.partialorder %v1133_v43, inf  ;;  %v1143_v30 = vand.u32 2147483648, %v1133_v43 }
 0x13d   : > { %v1136_v28 = vadd.f32 %v1131_v21, %v1126_v61  ;;  %4508 = vrsqrt.f32 %v1134_v20  ;;  %vm1147_vm6 = vcmp.eq.f32.partialorder %v1134_v20, inf  ;;  %vm1149_vm7 = vcmp.eq.f32.partialorder %v1134_v20, 0.0 }
 0x13e   : > { %4510 = vrsqrt.f32 %v1135_v33  ;;  %v1150_v62 = vand.u32 2147483648, %v1134_v20  ;;  %vm1154_vm9 = vcmp.eq.f32.partialorder %v1135_v33, inf  ;;  %v1157_v21 = vand.u32 2147483648, %v1135_v33 }
 0x13f   : > { %4512 = vrsqrt.f32 %v1136_v28  ;;  %vm1161_vm10 = vcmp.eq.f32.partialorder %v1136_v28, inf  ;;  %v1164_v23 = vand.u32 2147483648, %v1136_v28  ;;  %vm1163_vm11 = vcmp.eq.f32.partialorder %v1136_v28, 0.0 }
 0x140   : > { %vm1142_vm12 = vcmp.eq.f32.partialorder %v1133_v43, 0.0  ;;  %vm1156_vm13 = vcmp.eq.f32.partialorder %v1135_v33, 0.0 }
 0x146   : > { %v4507_v3 = vpop.eup %4506 }
 0x147   : > { %v4509_v42 = vpop.eup %4508  ;;  %v1139_v19 = vmul.f32 %v4507_v3, %v1133_v43  ;;  %v1173_v3 = vld [vmem:[%s5905_s3] sm:$0xff] }
 0x148   : > { %v4511_v40 = vpop.eup %4510  ;;  %v1146_v29 = vmul.f32 %v4509_v42, %v1134_v20 }
 0x149   : > { %v4513_v44 = vpop.eup %4512  ;;  %v1141_v32 = vsel %vm1140_vm8, %v1133_v43, %v1139_v19  ;;  %v1153_v46 = vmul.f32 %v4511_v40, %v1135_v33  ;;  %v5937_v43 = vmov 0.0  }
 0x14a   : > { %v1148_v61 = vsel %vm1147_vm6, %v1134_v20, %v1146_v29  ;;  %v1160_v63 = vmul.f32 %v4513_v44, %v1136_v28  ;;  %v5286_v19 = vsel %vm1142_vm12, %v1143_v30, %v1141_v32 }
 0x14b   : > { %v5280_v24 = vsel %vm1149_vm7, %v1150_v62, %v1148_v61  ;;  %v1155_v42 = vsel %vm1154_vm9, %v1135_v33, %v1153_v46  ;;  %v1174_v33 = vld [vmem:[%s5905_s3 + $0x8] sm:$0xff] }
 0x14c   : > { %1660 = vmatprep.subr.mxu1 %v5280_v24  ;;  %v1162_v0 = vsel %vm1161_vm10, %v1136_v28, %v1160_v63  ;;  %v5292_v20 = vsel %vm1156_vm13, %v1157_v21, %v1155_v42  ;;  %v5320_v28 = vld [vmem:[%s5907_s5 + $0x8] sm:$0xff] }
 0x14d   : > { %1661 = vmatpush1.msra.mxu1 %v5286_v19  ;;  %v5289_v40 = vsel %vm1163_vm11, %v1164_v23, %v1162_v0  ;;  %v5306_v0 = vld [vmem:[%s5907_s5] sm:$0xff] }
 0x14e   : > { %3480 = vmatmul.mubr.msk.f32.vlgmr.msra.gmra.mrb[6].mxu1 %vm1653_vm5, %v1173_v3  ;;  %4316 = vmatprep.subr.bf16.mxu1 %v4315_v12  ;;  %v5339_v12 = vld [vmem:[%s5909_s7] sm:$0xff] }
 0x14f   : > { %4318 = vmatpush1.bf16.msra.mxu1 %v4317_v41  ;;  %1730 = vmatprep.mubr.f32.mxu1 %v5937_v43 }
 0x150   : > { %1737 = vmatprep.subr.mxu0 %v5289_v40  ;;  %1988 = vmatprep.subr.mxu1 %v1030_v51 }
 0x151   : > { %1738 = vmatpush1.msra.mxu0 %v5292_v20 }
 0x152   : > { %3481 = vmatmul.mubr.msk.f32.gmra.mrb[8].mxu1 %vm1653_vm5, %v1174_v33  ;;  %3482 = vmatmul.mubr.msk.f32.vlgmr.msra.gmra.mrb[12].mxu0 %vm1653_vm5, %v1173_v3 }
 0x153   : > { %1989 = vmatpush1.msra.mxu1 %v1028_v13  ;;  %2048 = vmatprep.mubr.f32.mxu1 %v5937_v43 }
 0x154   : > { %4324 = vmatprep.subr.msk.bf16.mxu1 %vm4826_vm3, %v4822_v38  ;;  %1807 = vmatprep.mubr.f32.mxu0 %v5937_v43  ;;  %v5334_v38 = vld [vmem:[%s5907_s5 + $0x10] sm:$0xff] }
 0x156   : > { %3489 = vmatmul.mubr.msk.f32.vlgmr.msra.gmra.mrb[12].mxu1 %vm617_vm0, %v5306_v0  ;;  %3483 = vmatmul.mubr.msk.f32.gmra.mrb[14].mxu0 %vm1653_vm5, %v1174_v33 }
 0x157   : > { %3966 = vmatprep.mubr.msk.f32.mxu0 %vm1653_vm5, %v1173_v3  ;;  %2054 = vmatprep.mubr.f32.mxu1 %v5937_v43 }
 0x15a   : > { %4327 = vmatpush3.bf16.xpose.msk.msra.mxu1 %vm4826_vm3, %v4849_v49 }
 0x15b   : > { %4330 = vmatprep.subr.msk.bf16.mxu1 %vm4826_vm3, %v4853_v50  ;;  %3490 = vmatmul.mubr.msk.f32.gmra.mrb[14].mxu1 %vm617_vm0, %v5320_v28 }
 0x15c   : > { %2060 = vmatprep.mubr.f32.mxu1 %v5937_v43 }
 0x15f   : > { %3491 = vmatmul.mubr.msk.f32.gmra.mrb[16].mxu1 %vm617_vm0, %v5334_v38 }
 0x160   : > { %3827 = vmatprep.mubr.msk.f32.mxu1 %vm1177_vm2, %v5339_v12 }
 0x162   : > { %4333 = vmatpush3.bf16.xpose.msk.msra.mxu1 %vm4826_vm3, %v4889_v59 }
 0x163   : > { %4336 = vmatprep.subr.msk.bf16.mxu1 %vm4826_vm3, %v4893_v60 }
 0x16a   : > { %4339 = vmatpush3.bf16.xpose.msk.msra.mxu1 %vm4826_vm3, %v4921_v8 }
 0x16b   : > { %4342 = vmatprep.subr.msk.bf16.mxu1 %vm4826_vm3, %v4923_v9 }
 0x16f   : > { %v1099_v49 = vpop.f32.mrb[6].mxu0 }
 0x170   : > { %v3922_v50 = vpop.f32.mrb[7].mxu0  ;;  %v1117_v41 = vmul.f32 %v1099_v49, %v1099_v49 }
 0x172   : > { %4345 = vmatpush3.bf16.xpose.msk.msra.mxu1 %vm4826_vm3, %v4940_v17 }
 0x173   : > { %v1104_v59 = vpop.f32.mrb[8].mxu0  ;;  %4348 = vmatprep.subr.msk.bf16.mxu1 %vm4826_vm3, %v4942_v18 }
 0x174   : > { %v1122_v60 = vmul.f32 %v1104_v59, %v1104_v59  ;;  %v4320_v13 = vpack.c.bf16 %v1104_v59, %v1099_v49  ;;  %v3925_v51 = vpop.f32.mrb[9].mxu0 }
 0x176   : > { %v1127_v8 = vadd.f32 %v1122_v60, %v1117_v41 }
 0x177   : > { %v1109_v29 = vpop.f32.mrb[10].mxu0 }
 0x178   : > { %v1132_v62 = vmul.f32 %v1109_v29, %v1109_v29  ;;  %v3928_v30 = vpop.f32.mrb[11].mxu0 }
 0x17a   : > { %v1137_v9 = vadd.f32 %v1132_v62, %v1127_v8  ;;  %4351 = vmatpush3.bf16.xpose.msk.msra.mxu1 %vm4826_vm3, %v4959_v26 }
 0x17b   : > { %4354 = vmatprep.subr.msk.bf16.mxu1 %vm4826_vm3, %v4961_v27  ;;  %v5938_v27 = vpack.c.bf16 %v5257_v14, %v5243_v58 }
 0x17c   : > { %4514 = vrsqrt.f32 %v1137_v9  ;;  %vm1168_vm14 = vcmp.eq.f32.partialorder %v1137_v9, inf  ;;  %v1171_v44 = vand.u32 2147483648, %v1137_v9  ;;  %vm1170_vm15 = vcmp.eq.f32.partialorder %v1137_v9, 0.0 }
 0x182   : > { %4357 = vmatpush3.bf16.xpose.msk.msra.mxu1 %vm4826_vm3, %v4978_v35  ;;  %v5939_v35 = vpack.c.bf16 %v5249_v7, %v5241_v57 }
 0x183   : > { %4360 = vmatprep.subr.msk.bf16.mxu1 %vm4826_vm3, %v4980_v36  ;;  %v5940_v36 = vmov 0.0|0.0  }
 0x186   : > { %v4515_v17 = vpop.eup %4514 }
 0x187   : > { %v1167_v18 = vmul.f32 %v4515_v17, %v1137_v9 }
 0x189   : > { %v1169_v32 = vsel %vm1168_vm14, %v1137_v9, %v1167_v18 }
 0x18a   : > { %4363 = vmatpush3.bf16.xpose.msk.msra.mxu1 %vm4826_vm3, %v4997_v47  ;;  %v5378_v26 = vsel %vm1170_vm15, %v1171_v44, %v1169_v32  ;;  %v2579_v47 = vld [vmem:[%s5910_s8] sm:$0xff] }
 0x18b   : > { %3964 = vmatprep.subr.mxu0 %v5378_v26  ;;  %4366 = vmatprep.subr.msk.bf16.mxu1 %vm4826_vm3, %v4999_v52  ;;  %v4573_v52 = vmov 0  }
 0x18c   : > { %3965 = vmatpush3.msra.mxu0 %v5378_v26  ;;  %4505 = vset.pattern.permute.xlu0 %v4573_v52 }
 0x18d   : > { %3967 = vmatmul.mubr.msk.f32.vlgmr.msra.gmra.mrb[16].mxu0 %vm1653_vm5, %v1174_v33  ;;  %4312 = vmatprep.subr.bf16.mxu0 %v5938_v27 }
 0x18e   : > { %4314 = vmatpush1.bf16.msra.mxu0 %v5939_v35  ;;  %1965 = vmatprep.mubr.f32.mxu0 %v5937_v43 }
 0x18f   : > { %1905 = vmatprep.subr.mxu0 %v5275_v56  ;;  %2582 = vperm.xlu0 %4505, %v2579_v47  }
 0x192   : > { %1906 = vmatpush1.msra.mxu0 %v5270_v53  ;;  %4369 = vmatpush3.bf16.xpose.msk.msra.mxu1 %vm4826_vm3, %v5020_v5 }
 0x193   : > { %3486 = vmatmul.mubr.msk.f32.vlgmr.msra.gmra.mrb[18].mxu0 %vm617_vm0, %v5306_v0  ;;  %4319 = vmatprep.subr.bf16.mxu0 %v5940_v36 }
 0x194   : > { %4321 = vmatpush3.bf16.msra.mxu0 %v4320_v13  ;;  %1971 = vmatprep.mubr.f32.mxu0 %v5937_v43 }
 0x195   : > { %3973 = vmatprep.subr.mxu0 %v5937_v43  ;;  %4418 = vmatprep.subr.bf16.mxu1 %v5940_v36 }
 0x197   : > { %3487 = vmatmul.mubr.msk.f32.gmra.mrb[20].mxu0 %vm617_vm0, %v5320_v28 }
 0x198   : > { %3974 = vmatpush3.msra.mxu0 %v1109_v29  ;;  %1977 = vmatprep.mubr.f32.mxu0 %v5937_v43 }
 0x199   : > { %3828 = vmatmul.mubr.msk.f32.vlgmr.msra.gmra.mrb[18].mxu1 %vm1177_vm2, %v5339_v12  ;;  %4372 = vmatprep.subr.msk.bf16.mxu0 %vm4826_vm3, %v5018_v4 }
 0x19a   : > { %4421 = vmatpush3.bf16.xpose.msk.msra.mxu1 %vm4826_vm3, %v5022_v6  ;;  %4016 = vmatprep.mubr.msk.f32.mxu1 %vm4571_vm4, %v5937_v43  ;;  %v5941_v6 = vld [vmem:[#allocation4_spill] sm:$0xff] }
 0x19b   : > { %3488 = vmatmul.mubr.msk.f32.gmra.mrb[22].mxu0 %vm617_vm0, %v5334_v38  ;;  %4422 = vmatprep.subr.bf16.mxu1 %v5940_v36 }
 0x19c   : > { %3975 = vmatprep.mubr.msk.f32.mxu0 %vm4571_vm4, %v5937_v43 }
 0x19f   : > { %3976 = vmatmul.mubr.msk.f32.vlgmr.msra.gmra.mrb[24].mxu0 %vm617_vm0, %v5306_v0 }
 0x1a0   : > { %4375 = vmatpush3.bf16.xpose.msk.msra.mxu0 %vm4826_vm3, %v5039_v1  ;;  %3978 = vmatprep.mubr.msk.f32.mxu0 %vm4571_vm4, %v5937_v43  ;;  %v5942_v1 = vld [vmem:[#allocation5_spill] sm:$0xff] }
 0x1a1   : > { %4378 = vmatprep.subr.msk.bf16.mxu0 %vm4826_vm3, %v5043_v15  ;;  %v5943_v15 = vld [vmem:[#allocation6_spill] sm:$0xff] }
 0x1a2   : > { %4425 = vmatpush3.bf16.xpose.msk.msra.mxu1 %vm4826_vm3, %v5047_v16  ;;  %v5944_v16 = vld [vmem:[#allocation7_spill] sm:$0xff] }
 0x1a3   : > { %4426 = vmatprep.subr.bf16.mxu1 %v5940_v36  ;;  %3979 = vmatmul.mubr.msk.f32.gmra.mrb[26].mxu0 %vm617_vm0, %v5320_v28 }
 0x1a4   : > { %3981 = vmatprep.mubr.msk.f32.mxu0 %vm4571_vm4, %v5937_v43 }
 0x1a7   : > { %3982 = vmatmul.mubr.msk.f32.gmra.mrb[28].mxu0 %vm617_vm0, %v5334_v38 }
 0x1a8   : > { %4381 = vmatpush3.bf16.xpose.msk.msra.mxu0 %vm4826_vm3, %v5073_v22  ;;  %3861 = vmatprep.mubr.msk.f32.mxu0 %vm1177_vm2, %v5339_v12  ;;  %v5945_v22 = vld [vmem:[#allocation8_spill] sm:$0xff] }
 0x1a9   : > { %4384 = vmatprep.subr.msk.bf16.mxu0 %vm4826_vm3, %v5077_v25  ;;  %v5946_v25 = vld [vmem:[#allocation9_spill] sm:$0xff] }
 0x1aa   : > { %4429 = vmatpush3.bf16.xpose.msk.msra.mxu1 %vm4826_vm3, %v5081_v48  ;;  %v5947_v48 = vld [vmem:[#allocation10_spill] sm:$0xff] }
 0x1ab   : > { %4430 = vmatprep.subr.bf16.mxu1 %v5940_v36 }
 0x1b0   : > { %4387 = vmatpush3.bf16.xpose.msk.msra.mxu0 %vm4826_vm3, %v5101_v31  ;;  %v2147_v31 = vld [vmem:[%s5908_s6] sm:$0xff] }
 0x1b1   : > { %4390 = vmatprep.subr.msk.bf16.mxu0 %vm4826_vm3, %v5105_v34  ;;  %v5463_v4 = vpop.f32.mrb[10].mxu1 }
 0x1b2   : > { %4433 = vmatpush3.bf16.xpose.msk.msra.mxu1 %vm4826_vm3, %v5107_v37  ;;  %v5468_v5 = vpop.f32.mrb[11].mxu1 }
 0x1b3   : > { %4434 = vmatprep.subr.bf16.mxu1 %v5940_v36 }
 0x1b8   : > { %4393 = vmatpush3.bf16.xpose.msk.msra.mxu0 %vm4826_vm3, %v5125_v45 }
 0x1b9   : > { %4396 = vmatprep.subr.msk.bf16.mxu0 %vm4826_vm3, %v5129_v54 }
 0x1ba   : > { %4437 = vmatpush3.bf16.xpose.msk.msra.mxu1 %vm4826_vm3, %v5131_v55 }
 0x1bb   : > { %4438 = vmatprep.subr.bf16.mxu1 %v5940_v36 }
 0x1c0   : > { %4399 = vmatpush3.bf16.xpose.msk.msra.mxu0 %vm4826_vm3, %v5149_v2 }
 0x1c1   : > { %4402 = vmatprep.subr.msk.bf16.mxu0 %vm4826_vm3, %v5153_v10 }
 0x1c2   : > { %4441 = vmatpush3.bf16.xpose.msk.msra.mxu1 %vm4826_vm3, %v5155_v11 }
 0x1c3   : > { %4442 = vmatprep.subr.bf16.mxu1 %v5940_v36 }
 0x1c8   : > { %4405 = vmatpush3.bf16.xpose.msk.msra.mxu0 %vm4826_vm3, %v5941_v6 }
 0x1c9   : > { %4408 = vmatprep.subr.msk.bf16.mxu0 %vm4826_vm3, %v5942_v1 }
 0x1ca   : > { %4445 = vmatpush3.bf16.xpose.msk.msra.mxu1 %vm4826_vm3, %v5943_v15 }
 0x1cb   : > { %4446 = vmatprep.subr.bf16.mxu1 %v5940_v36 }
 0x1d0   : > { %4411 = vmatpush3.bf16.xpose.msk.msra.mxu0 %vm4826_vm3, %v5944_v16 }
 0x1d1   : > { %4414 = vmatprep.subr.msk.bf16.mxu0 %vm4826_vm3, %v5945_v22 }
 0x1d2   : > { %4449 = vmatpush3.bf16.xpose.msk.msra.mxu1 %vm4826_vm3, %v5946_v25 }
 0x1d3   : > { %2367 = vmatprep.subr.mxu1 %v5280_v24 }
 0x1d8   : > { %4417 = vmatpush3.bf16.xpose.msk.msra.mxu0 %vm4826_vm3, %v5947_v48 }
 0x1d9   : > { %2438 = vmatprep.subr.mxu0 %v5289_v40  ;;  %4017 = vmatmul.mubr.msk.f32.vlgmr.msra.gmra.mrb[20].mxu1 %vm1177_vm2, %v5339_v12 }
 0x1da   : > { %2368 = vmatpush1.msra.mxu1 %v5286_v19  ;;  %2431 = vmatprep.mubr.f32.mxu1 %v5937_v43 }
 0x1dd   : > { %3578 = vmatmul.mubr.msk.f32.vlgmr.msra.gmra.mrb[18].mxu1 %vm1653_vm5, %v2147_v31 }
 0x1df   : > { %3862 = vmatmul.mubr.msk.f32.vlgmr.msra.gmra.mrb[30].mxu0 %vm1177_vm2, %v5339_v12 }
 0x1e0   : > { %2439 = vmatpush1.msra.mxu0 %v5292_v20  ;;  %2502 = vmatprep.mubr.f32.mxu0 %v5937_v43 }
 0x1e1   : > { %4019 = vmatprep.subr.mxu0 %v5937_v43 }
 0x1e7   : > { %3579 = vmatmul.mubr.msk.f32.vlgmr.msra.gmra.mrb[30].mxu0 %vm1653_vm5, %v2147_v31 }
 0x1e8   : > { %4020 = vmatpush3.msra.mxu0 %v5378_v26  ;;  %4021 = vmatprep.mubr.msk.f32.mxu0 %vm4571_vm4, %v5937_v43 }
 0x1eb   : > { %4022 = vmatmul.mubr.msk.f32.vlgmr.msra.gmra.mrb[32].mxu0 %vm1653_vm5, %v2147_v31 }
 0x1ec   : > { %2711 = vmatprep.mubr.f32.mxu0 %v5937_v43 }
 0x221   : > { %v1726_v39 = vpop.f32.mrb[6].mxu1 }
 0x222   : > { %vm3068_vm1 = vcmp.ge.f32.partialorder %v1726_v39, 0.0  ;;  %v3078_v34 = vmul.f32 0.01, %v1726_v39  ;;  %v1728_v37 = vpop.f32.mrb[7].mxu1 }
 0x223   : > { %vm3069_vm2 = vcmp.ge.f32.partialorder %v1728_v37, 0.0  ;;  %v3079_v45 = vmul.f32 0.01, %v1728_v37 }
 0x224   : > { %v3088_v54 = vsel %vm3068_vm1, %v1726_v39, %v3078_v34 }
 0x225   : > { %3098 = vst [vmem:[%s5537_s19] sm:$0xff] %v3088_v54  ;;  %v3089_v55 = vsel %vm3069_vm2, %v1728_v37, %v3079_v45  ;;  %v1732_v2 = vpop.f32.mrb[8].mxu1  ;;  %v1803_v10 = vpop.f32.mrb[12].mxu0 }
 0x226   : > { %3099 = vst [vmem:[%s5537_s19 + $0x8] sm:$0xff] %v3089_v55  ;;  %vm3073_vm3 = vcmp.ge.f32.partialorder %v1732_v2, 0.0  ;;  %v3083_v11 = vmul.f32 0.01, %v1732_v2  ;;  %v1734_v24 = vpop.f32.mrb[9].mxu1  ;;  %vm3070_vm5 = vcmp.ge.f32.partialorder %v1803_v10, 0.0 }
 0x227   : > { %v1805_v56 = vpop.f32.mrb[13].mxu0  ;;  %vm3074_vm6 = vcmp.ge.f32.partialorder %v1734_v24, 0.0  ;;  %v3084_v57 = vmul.f32 0.01, %v1734_v24  ;;  %v3080_v58 = vmul.f32 0.01, %v1803_v10 }
 0x228   : > { %vm3071_vm7 = vcmp.ge.f32.partialorder %v1805_v56, 0.0  ;;  %v3093_v7 = vsel %vm3073_vm3, %v1732_v2, %v3083_v11  ;;  %v3081_v14 = vmul.f32 0.01, %v1805_v56 }
 0x229   : > { %3103 = vst [vmem:[%s5537_s19 + $0x28] sm:$0xff] %v3093_v7  ;;  %v3094_v53 = vsel %vm3074_vm6, %v1734_v24, %v3084_v57  ;;  %v5542_v23 = vpop.f32.mrb[12].mxu1  ;;  %v3090_v46 = vsel %vm3070_vm5, %v1803_v10, %v3080_v58  ;;  %v1809_v61 = vpop.f32.mrb[14].mxu0 }
 0x22a   : > { %3104 = vst [vmem:[%s5537_s19 + $0x30] sm:$0xff] %v3094_v53  ;;  %v5545_v63 = vpop.f32.mrb[13].mxu1  ;;  %3100 = vst [vmem:[%s5537_s19 + $0x10] sm:$0xff] %v3090_v46  ;;  %v3091_v21 = vsel %vm3071_vm7, %v1805_v56, %v3081_v14  ;;  %vm3075_vm8 = vcmp.ge.f32.partialorder %v1809_v61, 0.0  ;;  %v3085_v3 = vmul.f32 0.01, %v1809_v61 }
 0x22b   : > { %v1811_v42 = vpop.f32.mrb[15].mxu0  ;;  %3101 = vst [vmem:[%s5537_s19 + $0x18] sm:$0xff] %v3091_v21 }
 0x22c   : > { %vm3076_vm9 = vcmp.ge.f32.partialorder %v1811_v42, 0.0  ;;  %v3086_v19 = vmul.f32 0.01, %v1811_v42  ;;  %v3095_v40 = vsel %vm3075_vm8, %v1809_v61, %v3085_v3 }
 0x22d   : > { %3105 = vst [vmem:[%s5537_s19 + $0x38] sm:$0xff] %v3095_v40 }
 0x22e   : > { %v3096_v20 = vsel %vm3076_vm9, %v1811_v42, %v3086_v19  ;;  %v5551_v33 = vpop.f32.mrb[14].mxu1 }
 0x22f   : > { %3106 = vst [vmem:[%s5537_s19 + $0x40] sm:$0xff] %v3096_v20  ;;  %v5553_v0 = vpop.f32.mrb[15].mxu1 }
 0x232   : > { %v5555_v28 = vpop.f32.mrb[16].mxu1 }
 0x233   : > { %v5557_v38 = vpop.f32.mrb[17].mxu1 }
 0x260   : > { %v3968_v12 = vpop.f32.mrb[16].mxu0 }
 0x261   : > { %v1886_v49 = vadd.f32 %v3968_v12, %v5463_v4  ;;  %v1880_v50 = vpop.f32.mrb[17].mxu0  ;;  %v2583_v4 = vpop.permute.xlu0 %2582 }
 0x262   : > { %v1881_v41 = vadd.f32 %v1880_v50, %v5468_v5 }
 0x263   : > { %vm3077_vm10 = vcmp.ge.f32.partialorder %v1886_v49, 0.0  ;;  %v3087_v59 = vmul.f32 0.01, %v1886_v49 }
 0x264   : > { %vm3072_vm11 = vcmp.ge.f32.partialorder %v1881_v41, 0.0  ;;  %v3082_v60 = vmul.f32 0.01, %v1881_v41 }
 0x265   : > { %v3097_v13 = vsel %vm3077_vm10, %v1886_v49, %v3087_v59  ;;  %v2635_v59 = vld [vmem:[%s5911_s9] sm:$0xff] }
 0x266   : > { %3107 = vst [vmem:[%s5537_s19 + $0x48] sm:$0xff] %v3097_v13  ;;  %v3092_v51 = vsel %vm3072_vm11, %v1881_v41, %v3082_v60  ;;  %v1967_v8 = vpop.f32.mrb[18].mxu0 }
 0x267   : > { %3102 = vst [vmem:[%s5537_s19 + $0x20] sm:$0xff] %v3092_v51  ;;  %v1969_v29 = vpop.f32.mrb[19].mxu0 }
 0x26a   : > { %v1973_v62 = vpop.f32.mrb[20].mxu0 }
 0x26b   : > { %v1975_v30 = vpop.f32.mrb[21].mxu0 }
 0x26e   : > { %v1979_v9 = vpop.f32.mrb[22].mxu0 }
 0x26f   : > { %v1981_v17 = vpop.f32.mrb[23].mxu0 }
 0x272   : > { %v5563_v18 = vpop.f32.mrb[24].mxu0 }
 0x273   : > { %v3977_v44 = vpop.f32.mrb[25].mxu0 }
 0x276   : > { %v5565_v32 = vpop.f32.mrb[26].mxu0 }
 0x277   : > { %v3980_v26 = vpop.f32.mrb[27].mxu0 }
 0x27a   : > { %v5567_v27 = vpop.f32.mrb[28].mxu0 }
 0x27b   : > { %v3983_v35 = vpop.f32.mrb[29].mxu0 }
 0x2ac   : > { %v2360_v47 = vpop.f32.mrb[20].mxu1 }
 0x2ad   : > { %v4018_v52 = vpop.f32.mrb[21].mxu1 }
 0x2b0   : > { %v2433_v5 = vpop.f32.mrb[18].mxu1 }
 0x2b1   : > { %v2585_v6 = vadd.f32 %v2583_v4, %v2433_v5  ;;  %v2435_v1 = vpop.f32.mrb[19].mxu1 }
 0x2b2   : > { %v2586_v15 = vadd.f32 %v2583_v4, %v2435_v1 }
 0x2b3   : > { %v3581_v16 = vmul.f32 -1.442695, %v2585_v6 }
 0x2b4   : > { %v3582_v22 = vmul.f32 -1.442695, %v2586_v15 }
 0x2b5   : > { %4516 = vpow2.f32 %v3581_v16 }
 0x2b6   : > { %4518 = vpow2.f32 %v3582_v22 }
 0x2ba   : > { %v2504_v25 = vpop.f32.mrb[30].mxu0 }
 0x2bb   : > { %v2587_v48 = vadd.f32 %v2583_v4, %v2504_v25  ;;  %v2506_v31 = vpop.f32.mrb[31].mxu0 }
 0x2bc   : > { %v2588_v39 = vadd.f32 %v2583_v4, %v2506_v31 }
 0x2bd   : > { %v3583_v34 = vmul.f32 -1.442695, %v2587_v48 }
 0x2be   : > { %v3584_v37 = vmul.f32 -1.442695, %v2588_v39  ;;  %v2575_v45 = vpop.f32.mrb[32].mxu0 }
 0x2bf   : > { %v4517_v54 = vpop.eup %4516  ;;  %4520 = vpow2.f32 %v3583_v34  ;;  %v2576_v55 = vadd.f32 %v2575_v45, %v2360_v47  ;;  %v4023_v2 = vpop.f32.mrb[33].mxu0 }
 0x2c0   : > { %v4519_v10 = vpop.eup %4518  ;;  %v2605_v11 = vadd.f32 1.0, %v4517_v54  ;;  %4522 = vpow2.f32 %v3584_v37 }
 0x2c1   : > { %v2606_v24 = vadd.f32 1.0, %v4519_v10  ;;  %v2589_v56 = vadd.f32 %v2583_v4, %v2576_v55 }
 0x2c2   : > { %4524 = vrcp.f32 %v2605_v11 }
 0x2c3   : > { %4526 = vrcp.f32 %v2606_v24  ;;  %v3585_v57 = vmul.f32 -1.442695, %v2589_v56 }
 0x2c5   : > { %4528 = vpow2.f32 %v3585_v57 }
 0x2c9   : > { %v4521_v58 = vpop.eup %4520 }
 0x2ca   : > { %v4523_v7 = vpop.eup %4522  ;;  %v2607_v14 = vadd.f32 1.0, %v4521_v58 }
 0x2cb   : > { %v2608_v53 = vadd.f32 1.0, %v4523_v7 }
 0x2cc   : > { %v4525_v46 = vpop.eup %4524  ;;  %4530 = vrcp.f32 %v2607_v14 }
 0x2cd   : > { %v4527_v61 = vpop.eup %4526  ;;  %4532 = vrcp.f32 %v2608_v53  ;;  %v5569_v21 = vmul.f32 %v4525_v46, %v1967_v8  ;;  %v5571_v3 = vmul.f32 %v4525_v46, %v1973_v62  ;;  %v5573_v42 = vmul.f32 %v4525_v46, %v1979_v9 }
 0x2ce   : > { %v5575_v19 = vmul.f32 %v4527_v61, %v1969_v29  ;;  %v5577_v40 = vmul.f32 %v4527_v61, %v1975_v30  ;;  %v5579_v20 = vmul.f32 %v4527_v61, %v1981_v17 }
 0x2cf   : > { %v4529_v12 = vpop.eup %4528  ;;  %v4452_v41 = vpack.c.bf16 %v5571_v3, %v5569_v21 }
 0x2d0   : > { %v2609_v49 = vadd.f32 1.0, %v4529_v12  ;;  %v4450_v50 = vpack.c.bf16 %v5577_v40, %v5575_v19 }
 0x2d2   : > { %4534 = vrcp.f32 %v2609_v49  ;;  %4451 = vmatprep.subr.bf16.mxu0 %v4450_v50 }
 0x2d3   : > { %4453 = vmatpush1.bf16.msra.mxu0 %v4452_v41 }
 0x2d4   : > { %2651 = vmatprep.subr.mxu0 %v5579_v20 }
 0x2d6   : > { %v4531_v60 = vpop.eup %4530 }
 0x2d7   : > { %v4533_v13 = vpop.eup %4532  ;;  %2652 = vmatpush1.msra.mxu0 %v5573_v42  ;;  %v5591_v51 = vmul.f32 %v4531_v60, %v5542_v23  ;;  %v5594_v8 = vmul.f32 %v4531_v60, %v5551_v33  ;;  %v5597_v29 = vmul.f32 %v4531_v60, %v5555_v28  ;;  %v2636_v23 = vld [vmem:[%s5911_s9 + $0x8] sm:$0xff] }
 0x2d8   : > { %3586 = vmatmul.mubr.msk.f32.vlgmr.msra.gmra.mrb[34].mxu0 %vm617_vm0, %v2635_v59  ;;  %v5601_v62 = vmul.f32 %v4533_v13, %v5545_v63  ;;  %v5604_v30 = vmul.f32 %v4533_v13, %v5553_v0  ;;  %v5607_v9 = vmul.f32 %v4533_v13, %v5557_v38  ;;  %v2637_v0 = vld [vmem:[%s5911_s9 + $0x10] sm:$0xff] }
 0x2d9   : > { %2717 = vmatprep.mubr.f32.mxu0 %v5937_v43  ;;  %v4456_v28 = vpack.c.bf16 %v5594_v8, %v5591_v51 }
 0x2da   : > { %v4454_v33 = vpack.c.bf16 %v5604_v30, %v5601_v62 }
 0x2dc   : > { %v4535_v63 = vpop.eup %4534  ;;  %4455 = vmatprep.subr.bf16.mxu0 %v4454_v33  ;;  %3587 = vmatmul.mubr.msk.f32.gmra.mrb[36].mxu0 %vm617_vm0, %v2636_v23 }
 0x2dd   : > { %4457 = vmatpush1.bf16.msra.mxu0 %v4456_v28  ;;  %2723 = vmatprep.mubr.f32.mxu0 %v5937_v43  ;;  %v5623_v38 = vmul.f32 %v4535_v63, %v5563_v18  ;;  %v5626_v17 = vmul.f32 %v4535_v63, %v5565_v32  ;;  %v5629_v44 = vmul.f32 %v4535_v63, %v5567_v27 }
 0x2de   : > { %2734 = vmatprep.subr.mxu0 %v5607_v9 }
 0x2df   : > { %v4459_v18 = vpack.c.bf16 %v5626_v17, %v5623_v38 }
 0x2e0   : > { %3588 = vmatmul.mubr.msk.f32.gmra.mrb[38].mxu0 %vm617_vm0, %v2637_v0 }
 0x2e1   : > { %2735 = vmatpush1.msra.mxu0 %v5597_v29  ;;  %2794 = vmatprep.mubr.f32.mxu0 %v5937_v43 }
 0x2e2   : > { %4458 = vmatprep.subr.bf16.mxu0 %v5940_v36 }
 0x2e4   : > { %3589 = vmatmul.mubr.msk.f32.vlgmr.msra.gmra.mrb[40].mxu0 %vm617_vm0, %v2635_v59 }
 0x2e5   : > { %4460 = vmatpush3.bf16.msra.mxu0 %v4459_v18  ;;  %2800 = vmatprep.mubr.f32.mxu0 %v5937_v43  ;;  %v2963_v18 = vmul.f32 0.01, %v5569_v21 }
 0x2e6   : > { %4028 = vmatprep.subr.mxu0 %v5937_v43 }
 0x2e8   : > { %3590 = vmatmul.mubr.msk.f32.gmra.mrb[42].mxu0 %vm617_vm0, %v2636_v23 }
 0x2e9   : > { %4029 = vmatpush3.msra.mxu0 %v5629_v44  ;;  %2806 = vmatprep.mubr.f32.mxu0 %v5937_v43 }
 0x2ec   : > { %3591 = vmatmul.mubr.msk.f32.gmra.mrb[44].mxu0 %vm617_vm0, %v2637_v0 }
 0x2ed   : > { %4030 = vmatprep.mubr.msk.f32.mxu0 %vm4571_vm4, %v5937_v43 }
 0x2f0   : > { %4031 = vmatmul.mubr.msk.f32.vlgmr.msra.gmra.mrb[46].mxu0 %vm617_vm0, %v2635_v59 }
 0x2f1   : > { %4033 = vmatprep.mubr.msk.f32.mxu0 %vm4571_vm4, %v5937_v43 }
 0x2f4   : > { %4034 = vmatmul.mubr.msk.f32.gmra.mrb[48].mxu0 %vm617_vm0, %v2636_v23 }
 0x2f5   : > { %4036 = vmatprep.mubr.msk.f32.mxu0 %vm4571_vm4, %v5937_v43 }
 0x2f8   : > { %4037 = vmatmul.mubr.msk.f32.gmra.mrb[50].mxu0 %vm617_vm0, %v2637_v0 }
 0x3ab   : > { %v5654_v36 = vpop.f32.mrb[34].mxu0 }
 0x3ac   : > { %v5656_v32 = vpop.f32.mrb[35].mxu0  ;;  %v2893_v27 = vmul.f32 %v5654_v36, %v5569_v21  ;;  %v2918_v35 = vmul.f32 %v5654_v36, %v5654_v36 }
 0x3ad   : > { %v2894_v4 = vmul.f32 %v5656_v32, %v5575_v19  ;;  %v2919_v5 = vmul.f32 %v5656_v32, %v5656_v32 }
 0x3af   : > { %v5658_v26 = vpop.f32.mrb[36].mxu0 }
 0x3b0   : > { %v2898_v47 = vmul.f32 %v5658_v26, %v5571_v3  ;;  %v2923_v43 = vmul.f32 %v5658_v26, %v5658_v26  ;;  %v5668_v52 = vpop.f32.mrb[37].mxu0 }
 0x3b1   : > { %v2899_v6 = vmul.f32 %v5668_v52, %v5577_v40  ;;  %v2924_v1 = vmul.f32 %v5668_v52, %v5668_v52 }
 0x3b2   : > { %v2903_v15 = vadd.f32 %v2898_v47, %v2893_v27  ;;  %v2928_v16 = vadd.f32 %v2923_v43, %v2918_v35  ;;  %v2998_v47 = vmul.f32 0.01, %v5571_v3  ;;  %v3033_v43 = vmul.f32 0.01, %v5573_v42 }
 0x3b3   : > { %v2904_v22 = vadd.f32 %v2899_v6, %v2894_v4  ;;  %v2929_v25 = vadd.f32 %v2924_v1, %v2919_v5  ;;  %v2725_v48 = vpop.f32.mrb[38].mxu0  ;;  %v2964_v6 = vmul.f32 0.01, %v5575_v19  ;;  %v5732_v1 = vmul.f32 0.01, %v5577_v40 }
 0x3b4   : > { %v2908_v31 = vmul.f32 %v2725_v48, %v5573_v42  ;;  %v2933_v39 = vmul.f32 %v2725_v48, %v2725_v48  ;;  %v5679_v34 = vpop.f32.mrb[39].mxu0 }
 0x3b5   : > { %v2909_v37 = vmul.f32 %v5679_v34, %v5579_v20  ;;  %v2934_v45 = vmul.f32 %v5679_v34, %v5679_v34 }
 0x3b6   : > { %v5685_v54 = vadd.f32 %v2908_v31, %v2903_v15  ;;  %v2938_v55 = vadd.f32 %v2933_v39, %v2928_v16  ;;  %v3034_v31 = vmul.f32 0.01, %v5579_v20 }
 0x3b7   : > { %v5687_v2 = vadd.f32 %v2909_v37, %v2904_v22  ;;  %v2939_v10 = vadd.f32 %v2934_v45, %v2929_v25  ;;  %v5689_v11 = vpop.f32.mrb[40].mxu0 }
 0x3b8   : > { %v2943_v24 = vadd.f32 1e-06, %v2938_v55  ;;  %v5691_v56 = vpop.f32.mrb[41].mxu0  ;;  %v2895_v7 = vmul.f32 %v5689_v11, %v5591_v51  ;;  %v2920_v14 = vmul.f32 %v5689_v11, %v5689_v11  ;;  %vm2958_vm0 = vcmp.ge.f32.partialorder %v5685_v54, 0.0 }
 0x3b9   : > { %v2944_v57 = vadd.f32 1e-06, %v2939_v10  ;;  %v2896_v12 = vmul.f32 %v5691_v56, %v5601_v62  ;;  %v2921_v49 = vmul.f32 %v5691_v56, %v5691_v56  ;;  %vm2959_vm4 = vcmp.ge.f32.partialorder %v5687_v2, 0.0 }
 0x3ba   : > { %4536 = vrcp.f32 %v2943_v24 }
 0x3bb   : > { %4538 = vrcp.f32 %v2944_v57  ;;  %v5693_v58 = vpop.f32.mrb[42].mxu0 }
 0x3bc   : > { %v2900_v53 = vmul.f32 %v5693_v58, %v5594_v8  ;;  %v2925_v46 = vmul.f32 %v5693_v58, %v5693_v58  ;;  %v5703_v61 = vpop.f32.mrb[43].mxu0 }
 0x3bd   : > { %v2901_v50 = vmul.f32 %v5703_v61, %v5604_v30  ;;  %v2926_v41 = vmul.f32 %v5703_v61, %v5703_v61 }
 0x3be   : > { %v2905_v59 = vadd.f32 %v2900_v53, %v2895_v7  ;;  %v2930_v60 = vadd.f32 %v2925_v46, %v2920_v14 }
 0x3bf   : > { %v2906_v13 = vadd.f32 %v2901_v50, %v2896_v12  ;;  %v2931_v23 = vadd.f32 %v2926_v41, %v2921_v49  ;;  %v5713_v33 = vpop.f32.mrb[44].mxu0 }
 0x3c0   : > { %v2910_v28 = vmul.f32 %v5713_v33, %v5597_v29  ;;  %v2935_v63 = vmul.f32 %v5713_v33, %v5713_v33  ;;  %v5719_v0 = vpop.f32.mrb[45].mxu0 }
 0x3c1   : > { %v2911_v27 = vmul.f32 %v5719_v0, %v5607_v9  ;;  %v2936_v35 = vmul.f32 %v5719_v0, %v5719_v0 }
 0x3c2   : > { %v5728_v4 = vadd.f32 %v2910_v28, %v2905_v59  ;;  %v2940_v5 = vadd.f32 %v2935_v63, %v2930_v60 }
 0x3c3   : > { %v5734_v15 = vadd.f32 %v2911_v27, %v2906_v13  ;;  %v2941_v16 = vadd.f32 %v2936_v35, %v2931_v23  ;;  %v5736_v22 = vpop.f32.mrb[46].mxu0 }
 0x3c4   : > { %v4537_v25 = vpop.eup %4536  ;;  %v2945_v39 = vadd.f32 1e-06, %v2940_v5  ;;  %v4032_v37 = vpop.f32.mrb[47].mxu0  ;;  %v2897_v57 = vmul.f32 %v5736_v22, %v5623_v38  ;;  %v2922_v7 = vmul.f32 %v5736_v22, %v5736_v22  ;;  %vm2960_vm12 = vcmp.ge.f32.partialorder %v5728_v4, 0.0 }
 0x3c5   : > { %v4539_v45 = vpop.eup %4538  ;;  %v2949_v55 = vmul.f32 %v4537_v25, %v5685_v54  ;;  %v2946_v10 = vadd.f32 1e-06, %v2941_v16  ;;  %vm2961_vm13 = vcmp.ge.f32.partialorder %v5734_v15, 0.0 }
 0x3c6   : > { %v2951_v24 = vmul.f32 %v4539_v45, %v5687_v2  ;;  %4540 = vrcp.f32 %v2945_v39 }
 0x3c7   : > { %v2968_v14 = vmul.f32 %v2949_v55, %v5654_v36  ;;  %v3003_v53 = vmul.f32 %v2949_v55, %v5658_v26  ;;  %v3038_v46 = vmul.f32 %v2949_v55, %v2725_v48  ;;  %4542 = vrcp.f32 %v2946_v10  ;;  %v5749_v12 = vpop.f32.mrb[48].mxu0 }
 0x3c8   : > { %v2969_v49 = vmul.f32 %v2951_v24, %v5656_v32  ;;  %v3004_v50 = vmul.f32 %v2951_v24, %v5668_v52  ;;  %v3039_v41 = vmul.f32 %v2951_v24, %v5679_v34  ;;  %v2902_v59 = vmul.f32 %v5749_v12, %v5626_v17  ;;  %v4035_v60 = vpop.f32.mrb[49].mxu0 }
 0x3c9   : > { %v2973_v36 = vsub.f32 %v5569_v21, %v2968_v14  ;;  %v3008_v26 = vsub.f32 %v5571_v3, %v3003_v53  ;;  %v3043_v48 = vsub.f32 %v5573_v42, %v3038_v46  ;;  %v2927_v32 = vmul.f32 %v5749_v12, %v5749_v12 }
 0x3ca   : > { %v2974_v52 = vsub.f32 %v5575_v19, %v2969_v49  ;;  %v3009_v34 = vsub.f32 %v5577_v40, %v3004_v50  ;;  %v3044_v13 = vsub.f32 %v5579_v20, %v3039_v41  ;;  %v2907_v23 = vadd.f32 %v2902_v59, %v2897_v57 }
 0x3cb   : > { %v2978_v28 = vsel %vm2958_vm0, %v5569_v21, %v2973_v36  ;;  %v3013_v63 = vsel %vm2958_vm0, %v5571_v3, %v3008_v26  ;;  %v3048_v27 = vsel %vm2958_vm0, %v5573_v42, %v3043_v48  ;;  %v2932_v35 = vadd.f32 %v2927_v32, %v2922_v7  ;;  %v5777_v5 = vpop.f32.mrb[50].mxu0 }
 0x3cc   : > { %v2983_v16 = vmul.f32 0.99, %v2978_v28  ;;  %v3018_v25 = vmul.f32 0.99, %v3013_v63  ;;  %v3053_v39 = vmul.f32 0.99, %v3048_v27  ;;  %v2979_v37 = vsel %vm2959_vm4, %v5575_v19, %v2974_v52 }
 0x3cd   : > { %v2984_v21 = vmul.f32 0.99, %v2979_v37  ;;  %v3014_v3 = vsel %vm2959_vm4, %v5577_v40, %v3009_v34  ;;  %v3049_v42 = vsel %vm2959_vm4, %v5579_v20, %v3044_v13  ;;  %v2912_v54 = vmul.f32 %v5777_v5, %v5629_v44  ;;  %v4038_v45 = vpop.f32.mrb[51].mxu0 }
 0x3ce   : > { %v2988_v55 = vadd.f32 %v2983_v16, %v2963_v18  ;;  %v3023_v10 = vadd.f32 %v3018_v25, %v2998_v47  ;;  %v3058_v24 = vadd.f32 %v3053_v39, %v3033_v43  ;;  %v3019_v57 = vmul.f32 0.99, %v3014_v3 }
 0x3cf   : > { %v2989_v7 = vadd.f32 %v2984_v21, %v2964_v6  ;;  %v3054_v14 = vmul.f32 0.99, %v3049_v42  ;;  %v5790_v19 = vadd.f32 %v2912_v54, %v2907_v23  ;;  %v2937_v53 = vmul.f32 %v5777_v5, %v5777_v5 }
 0x3d0   : > { %v4541_v40 = vpop.eup %4540  ;;  %2993 = vst [vmem:[%s5795_s17] sm:$0xff] %v2988_v55  ;;  %3028 = vst [vmem:[%s5795_s17 + $0x28] sm:$0xff] %v3023_v10  ;;  %v3024_v20 = vadd.f32 %v3019_v57, %v5732_v1  ;;  %v2965_v6 = vmul.f32 0.01, %v5591_v51  ;;  %v3000_v46 = vmul.f32 0.01, %v5594_v8 }
 0x3d1   : > { %3063 = vst [vmem:[%s5795_s17 + $0x50] sm:$0xff] %v3058_v24  ;;  %v4543_v2 = vpop.eup %4542  ;;  %2994 = vst [vmem:[%s5795_s17 + $0x8] sm:$0xff] %v2989_v7  ;;  %v3059_v18 = vadd.f32 %v3054_v14, %v3034_v31  ;;  %v2953_v47 = vmul.f32 %v4541_v40, %v5728_v4  ;;  %v2942_v43 = vadd.f32 %v2937_v53, %v2932_v35  ;;  %v3035_v49 = vmul.f32 0.01, %v5597_v29 }
 0x3d2   : > { %3029 = vst [vmem:[%s5795_s17 + $0x30] sm:$0xff] %v3024_v20  ;;  %v2955_v50 = vmul.f32 %v4543_v2, %v5734_v15  ;;  %v2966_v60 = vmul.f32 0.01, %v5601_v62  ;;  %v3001_v27 = vmul.f32 0.01, %v5604_v30  ;;  %vm2962_vm14 = vcmp.ge.f32.partialorder %v5790_v19, 0.0 }
 0x3d3   : > { %3064 = vst [vmem:[%s5795_s17 + $0x58] sm:$0xff] %v3059_v18  ;;  %v2970_v41 = vmul.f32 %v2953_v47, %v5689_v11  ;;  %v3005_v1 = vmul.f32 %v2953_v47, %v5693_v58  ;;  %v3040_v59 = vmul.f32 %v2953_v47, %v5713_v33  ;;  %v2947_v31 = vadd.f32 1e-06, %v2942_v43  ;;  %v3142_v47 = vld [vmem:[%s5537_s19 + $0x20] sm:$0xff] (%p4659_p4)  ;;  %v3144_v43 = vld [vmem:[%s5537_s19 + $0x28] sm:$0xff] (%p4659_p4) }
 0x3d4   : > { %v2971_v36 = vmul.f32 %v2955_v50, %v5691_v56  ;;  %v3006_v26 = vmul.f32 %v2955_v50, %v5703_v61  ;;  %v3041_v48 = vmul.f32 %v2955_v50, %v5719_v0  ;;  %v3036_v39 = vmul.f32 0.01, %v5607_v9  ;;  %3143 = vst [vmem:[%s3121_s15 + $0x20] sm:$0xff] (%p4659_p4), %v3142_v47  ;;  %3145 = vst [vmem:[%s3121_s15 + $0x50] sm:$0xff] (%p4659_p4), %v3144_v43  ;;  %v3152_v50 = vld [vmem:[%s5537_s19 + $0x48] sm:$0xff] (%p4659_p4) }
 0x3d5   : > { %v2975_v32 = vsub.f32 %v5591_v51, %v2970_v41  ;;  %v3010_v52 = vsub.f32 %v5594_v8, %v3005_v1  ;;  %v3045_v34 = vsub.f32 %v5597_v29, %v3040_v59  ;;  %4544 = vrcp.f32 %v2947_v31  ;;  %3153 = vst [vmem:[%s3121_s15 + $0x70] sm:$0xff] (%p4659_p4), %v3152_v50 }
 0x3d6   : > { %v2976_v11 = vsub.f32 %v5601_v62, %v2971_v36  ;;  %v3011_v58 = vsub.f32 %v5604_v30, %v3006_v26  ;;  %v3046_v33 = vsub.f32 %v5607_v9, %v3041_v48  ;;  %v2967_v24 = vmul.f32 0.01, %v5623_v38 }
 0x3d7   : > { %v2980_v56 = vsel %vm2960_vm12, %v5591_v51, %v2975_v32  ;;  %v3015_v61 = vsel %vm2960_vm12, %v5594_v8, %v3010_v52  ;;  %v3050_v0 = vsel %vm2960_vm12, %v5597_v29, %v3045_v34  ;;  %v3002_v57 = vmul.f32 0.01, %v5626_v17 }
 0x3d8   : > { %v2985_v13 = vmul.f32 0.99, %v2980_v56  ;;  %v3020_v23 = vmul.f32 0.99, %v3015_v61  ;;  %v3055_v4 = vmul.f32 0.99, %v3050_v0  ;;  %v2981_v28 = vsel %vm2961_vm13, %v5601_v62, %v2976_v11 }
 0x3d9   : > { %v2986_v63 = vmul.f32 0.99, %v2981_v28  ;;  %v3016_v51 = vsel %vm2961_vm13, %v5604_v30, %v3011_v58  ;;  %v3051_v8 = vsel %vm2961_vm13, %v5607_v9, %v3046_v33 }
 0x3da   : > { %v2990_v29 = vadd.f32 %v2985_v13, %v2965_v6  ;;  %v3025_v15 = vadd.f32 %v3020_v23, %v3000_v46  ;;  %v3060_v35 = vadd.f32 %v3055_v4, %v3035_v49  ;;  %v3021_v16 = vmul.f32 0.99, %v3016_v51  ;;  %v3146_v6 = vld [vmem:[%s5537_s19 + $0x30] sm:$0xff] (%p4659_p4)  ;;  %v3148_v46 = vld [vmem:[%s5537_s19 + $0x38] sm:$0xff] (%p4659_p4)  ;;  %v3150_v49 = vld [vmem:[%s5537_s19 + $0x40] sm:$0xff] (%p4659_p4) }
 0x3db   : > { %v2991_v25 = vadd.f32 %v2986_v63, %v2966_v60  ;;  %v3056_v37 = vmul.f32 0.99, %v3051_v8  ;;  %3147 = vst [vmem:[%s3121_s15 + $0x58] sm:$0xff] (%p4659_p4), %v3146_v6  ;;  %3149 = vst [vmem:[%s3121_s15 + $0x60] sm:$0xff] (%p4659_p4), %v3148_v46 }
 0x3dc   : > { %2995 = vst [vmem:[%s5795_s17 + $0x10] sm:$0xff] %v2990_v29  ;;  %3030 = vst [vmem:[%s5795_s17 + $0x38] sm:$0xff] %v3025_v15  ;;  %v3026_v62 = vadd.f32 %v3021_v16, %v3001_v27 }
 0x3dd   : > { %3065 = vst [vmem:[%s5795_s17 + $0x60] sm:$0xff] %v3060_v35  ;;  %2996 = vst [vmem:[%s5795_s17 + $0x18] sm:$0xff] %v2991_v25  ;;  %v3061_v21 = vadd.f32 %v3056_v37, %v3036_v39 }
 0x3de   : > { %3031 = vst [vmem:[%s5795_s17 + $0x40] sm:$0xff] %v3026_v62  ;;  %3151 = vst [vmem:[%s3121_s15 + $0x68] sm:$0xff] (%p4659_p4), %v3150_v49 }
 0x3df   : > { %v4545_v3 = vpop.eup %4544  ;;  %3066 = vst [vmem:[%s5795_s17 + $0x68] sm:$0xff] %v3061_v21 }
 0x3e0   : > { %v2957_v30 = vmul.f32 %v4545_v3, %v5790_v19  ;;  %v3140_v19 = vld [vmem:[%s5537_s19 + $0x18] sm:$0xff] (%p4659_p4) }
 0x3e1   : > { %3141 = vst [vmem:[%s3121_s15 + $0x18] sm:$0xff] (%p4659_p4), %v3140_v19 }
 0x3e2   : > { %v2972_v42 = vmul.f32 %v2957_v30, %v5736_v22  ;;  %v3007_v54 = vmul.f32 %v2957_v30, %v5749_v12  ;;  %v3042_v45 = vmul.f32 %v2957_v30, %v5777_v5  ;;  %v3037_v5 = vmul.f32 0.01, %v5629_v44 }
 0x3e4   : > { %v2977_v9 = vsub.f32 %v5623_v38, %v2972_v42  ;;  %v3012_v55 = vsub.f32 %v5626_v17, %v3007_v54  ;;  %v3047_v10 = vsub.f32 %v5629_v44, %v3042_v45 }
 0x3e6   : > { %v2982_v22 = vsel %vm2962_vm14, %v5623_v38, %v2977_v9  ;;  %v3017_v12 = vsel %vm2962_vm14, %v5626_v17, %v3012_v55  ;;  %v3052_v7 = vsel %vm2962_vm14, %v5629_v44, %v3047_v10  ;;  %3118 = sbr.rel (!%p4659_p4) target bundleno = 1005 (0x3ed), region = 64  ;;  %v3134_v38 = vld [vmem:[%s5537_s19] sm:$0xff] (%p4659_p4)  ;;  %v3136_v17 = vld [vmem:[%s5537_s19 + $0x8] sm:$0xff] (%p4659_p4)  ;;  %v3138_v44 = vld [vmem:[%s5537_s19 + $0x10] sm:$0xff] (%p4659_p4) }
 0x3e7   : > { %v2987_v14 = vmul.f32 0.99, %v2982_v22  ;;  %v3022_v53 = vmul.f32 0.99, %v3017_v12  ;;  %v3057_v40 = vmul.f32 0.99, %v3052_v7  ;;  %3135 = vst [vmem:[%s3121_s15] sm:$0xff] (%p4659_p4), %v3134_v38 }
 0x3e8   : > { %3137 = vst [vmem:[%s3121_s15 + $0x8] sm:$0xff] (%p4659_p4), %v3136_v17  ;;  %3139 = vst [vmem:[%s3121_s15 + $0x10] sm:$0xff] (%p4659_p4), %v3138_v44 }
 0x3e9   : > { %v2992_v20 = vadd.f32 %v2987_v14, %v2967_v24  ;;  %v3027_v2 = vadd.f32 %v3022_v53, %v3002_v57  ;;  %v3062_v18 = vadd.f32 %v3057_v40, %v3037_v5 }
 0x3eb   : > { %2997 = vst [vmem:[%s5795_s17 + $0x20] sm:$0xff] %v2992_v20  ;;  %3032 = vst [vmem:[%s5795_s17 + $0x48] sm:$0xff] %v3027_v2 }
 0x3ec   : > { %3067 = vst [vmem:[%s5795_s17 + $0x70] sm:$0xff] %v3062_v18 }
 0x3ed PF: > { %3159 = sbr.rel (!%p4659_p4) target bundleno = 1017 (0x3f9), region = 87  ;;  %v3175_v41 = vld [vmem:[%s5795_s17] sm:$0xff] (%p4659_p4)  ;;  %v3177_v1 = vld [vmem:[%s5795_s17 + $0x8] sm:$0xff] (%p4659_p4)  ;;  %v3179_v59 = vld [vmem:[%s5795_s17 + $0x10] sm:$0xff] (%p4659_p4) }
 0x3ee   : > { %s3600_s16 = smul.u32 (%p4659_p4), 40, %s4647_s20  ;;  %v3181_v31 = vld [vmem:[%s5795_s17 + $0x18] sm:$0xff] (%p4659_p4)  ;;  %v3185_v36 = vld [vmem:[%s5795_s17 + $0x28] sm:$0xff] (%p4659_p4)  ;;  %v3187_v26 = vld [vmem:[%s5795_s17 + $0x30] sm:$0xff] (%p4659_p4) }
 0x3ef   : > { %v3189_v48 = vld [vmem:[%s5795_s17 + $0x38] sm:$0xff] (%p4659_p4)  ;;  %v3191_v32 = vld [vmem:[%s5795_s17 + $0x40] sm:$0xff] (%p4659_p4)  ;;  %v3195_v34 = vld [vmem:[%s5795_s17 + $0x50] sm:$0xff] (%p4659_p4) }
 0x3f0   : > { %s3162_s22 = scalar_lea.vmem (%p4659_p4), %s5913_s11, %s3600_s16  ;;  %v3197_v11 = vld [vmem:[%s5795_s17 + $0x58] sm:$0xff] (%p4659_p4)  ;;  %v3199_v58 = vld [vmem:[%s5795_s17 + $0x60] sm:$0xff] (%p4659_p4)  ;;  %v3201_v33 = vld [vmem:[%s5795_s17 + $0x68] sm:$0xff] (%p4659_p4) }
 0x3f1   : > { %3176 = vst [vmem:[%s3162_s22] sm:$0xff] (%p4659_p4), %v3175_v41  ;;  %3178 = vst [vmem:[%s3162_s22 + $0x8] sm:$0xff] (%p4659_p4), %v3177_v1 }
 0x3f2   : > { %v3183_v60 = vld [vmem:[%s5795_s17 + $0x20] sm:$0xff] (%p4659_p4)  ;;  %3180 = vst [vmem:[%s3162_s22 + $0x10] sm:$0xff] (%p4659_p4), %v3179_v59  ;;  %3182 = vst [vmem:[%s3162_s22 + $0x18] sm:$0xff] (%p4659_p4), %v3181_v31  ;;  %v3193_v52 = vld [vmem:[%s5795_s17 + $0x48] sm:$0xff] (%p4659_p4) }
 0x3f3   : > { %3184 = vst [vmem:[%s3162_s22 + $0x20] sm:$0xff] (%p4659_p4), %v3183_v60  ;;  %3186 = vst [vmem:[%s3162_s22 + $0x50] sm:$0xff] (%p4659_p4), %v3185_v36  ;;  %v3203_v56 = vld [vmem:[%s5795_s17 + $0x70] sm:$0xff] (%p4659_p4) }
 0x3f4   : > { %3188 = vst [vmem:[%s3162_s22 + $0x58] sm:$0xff] %v3187_v26  ;;  %3190 = vst [vmem:[%s3162_s22 + $0x60] sm:$0xff] %v3189_v48 }
 0x3f5   : > { %3192 = vst [vmem:[%s3162_s22 + $0x68] sm:$0xff] %v3191_v32  ;;  %3194 = vst [vmem:[%s3162_s22 + $0x70] sm:$0xff] %v3193_v52 }
 0x3f6   : > { %3196 = vst [vmem:[%s3162_s22 + $0xa0] sm:$0xff] %v3195_v34  ;;  %3198 = vst [vmem:[%s3162_s22 + $0xa8] sm:$0xff] %v3197_v11 }
 0x3f7   : > { %3200 = vst [vmem:[%s3162_s22 + $0xb0] sm:$0xff] %v3199_v58  ;;  %3202 = vst [vmem:[%s3162_s22 + $0xb8] sm:$0xff] %v3201_v33 }
 0x3f8   : > { %3204 = vst [vmem:[%s3162_s22 + $0xc0] sm:$0xff] %v3203_v56 }
 0x3f9 PF: > { %p19_p8 = scmp.ge.s32.totalorder %s4649_s21, 4   ;;  %s5948_s17 = smov %s4564_s18 }
 0x3fa   : > { %s5949_s18 = smov %s4657_s24  ;;  %s5950_s19 = smov %s4649_s21 }
 0x3fb   :  { %21 = sbr.rel (!%p19_p8) target bundleno = 2 (0x2), region = 151 }

</bundles_post_ra>
